<compile_context>
chip_gen: v7x
topology: tpu7x:2x2x1
jax: 0.10.0
libtpu: 0.0.40
codegen_flags: <defaults>
</compile_context>

<pallas_src>
import functools

import jax
import jax.numpy as jnp
import numpy as np
from jax.experimental import pallas as pl
from jax.experimental.pallas import tpu as pltpu


def _round_up(x, m):
    return ((x + m - 1) // m) * m


# ----------------------------------------------------------------------------
# Pallas kernel: tiled (patches @ weight) with f32 VMEM accumulator.
# Bias + optional LeakyReLU are applied only in the K-finalize branch.
# ----------------------------------------------------------------------------
def _matmul_bias_act_kernel(p_ref, w_ref, b_ref, o_ref, acc_ref, *, negative_slope):
    k = pl.program_id(2)

    @pl.when(k == 0)
    def _init():
        acc_ref[...] = jnp.zeros_like(acc_ref)

    acc_ref[...] += jnp.dot(p_ref[...], w_ref[...],
                            preferred_element_type=jnp.float32)

    @pl.when(k == pl.num_programs(2) - 1)
    def _finalize():
        acc = acc_ref[...] + b_ref[...]            # (1, Nt) broadcasts over rows
        if negative_slope is not None:
            acc = jnp.where(acc >= 0.0, acc, negative_slope * acc)
        o_ref[...] = acc.astype(o_ref.dtype)


def _tiled_matmul_bias_act(patches, w2d, bias, *, negative_slope,
                           mt=512, kt=512, nt=128):
    """out[:M,:N] = act(patches @ w2d + bias); tiled, bf16 in / f32 accumulate."""
    M, K = patches.shape
    K2, N = w2d.shape
    assert K == K2

    # Tile sizes: sublane-aligned (16 for bf16 packing) and lane-aligned (128).
    Mt = min(mt, _round_up(M, 16))
    Kt = min(kt, _round_up(K, 128))
    Nt = min(nt, _round_up(N, 128))     # lane-dense output (>=128 lanes)
    Mp, Kp, Np = _round_up(M, Mt), _round_up(K, Kt), _round_up(N, Nt)

    # Zero-pad to tile multiples; padded K rows/cols contribute nothing.
    p_pad = jnp.pad(patches, ((0, Mp - M), (0, Kp - K))).astype(jnp.bfloat16)
    w_pad = jnp.pad(w2d, ((0, Kp - K), (0, Np - N))).astype(jnp.bfloat16)
    b_pad = jnp.pad(bias, (0, Np - N)).reshape(1, Np).astype(jnp.float32)

    grid = (Mp // Mt, Np // Nt, Kp // Kt)
    cost = pl.CostEstimate(
        flops=2 * Mp * Kp * Np,
        transcendentals=0,
        bytes_accessed=Mp * Kp * 2 + Kp * Np * 2 + Mp * Np * 4,
    )

    out = pl.pallas_call(
        functools.partial(_matmul_bias_act_kernel, negative_slope=negative_slope),
        out_shape=jax.ShapeDtypeStruct((Mp, Np), jnp.float32),
        grid=grid,
        in_specs=[
            pl.BlockSpec((Mt, Kt), lambda i, j, k: (i, k)),
            pl.BlockSpec((Kt, Nt), lambda i, j, k: (k, j)),
            pl.BlockSpec((1, Nt), lambda i, j, k: (0, j)),
        ],
        out_specs=pl.BlockSpec((Mt, Nt), lambda i, j, k: (i, j)),
        scratch_shapes=[pltpu.VMEM((Mt, Nt), jnp.float32)],
        compiler_params=pltpu.CompilerParams(
            dimension_semantics=("parallel", "parallel", "arbitrary"),
            vmem_limit_bytes=64 * 1024 * 1024,
        ),
        cost_estimate=cost,
    )(p_pad, w_pad, b_pad)

    return out[:M, :N]


# ----------------------------------------------------------------------------
# Conv2d (NHWC activations, OIHW weights) + optional LeakyReLU
# ----------------------------------------------------------------------------
def conv2d_lrelu_pallas(x_nhwc, w_oihw, b, *, stride, padding, negative_slope=None):
    B, H, W, Cin = x_nhwc.shape
    Cout, Cin2, kh, kw = w_oihw.shape
    assert Cin == Cin2

    xp = jnp.pad(x_nhwc, ((0, 0), (padding, padding), (padding, padding), (0, 0)))
    Hp, Wp = H + 2 * padding, W + 2 * padding
    Ho = (Hp - kh) // stride + 1
    Wo = (Wp - kw) // stride + 1

    # im2col from NHWC (channels fastest within each tap).
    # TODO(synk): fold the kh*kw tap loop into the K grid axis (manual DMA gather
    # from the padded NHWC input) to avoid materializing the ~16x im2col in HBM.
    cols = [xp[:, i:i + stride * Ho:stride, j:j + stride * Wo:stride, :]
            for i in range(kh) for j in range(kw)]
    patches = jnp.stack(cols, axis=3).reshape(B * Ho * Wo, kh * kw * Cin)

    # OIHW -> (kh*kw*Cin, Cout), column order matching the patches above.
    w2d = jnp.transpose(w_oihw, (2, 3, 1, 0)).reshape(kh * kw * Cin, Cout)

    out = _tiled_matmul_bias_act(patches, w2d, b, negative_slope=negative_slope)
    return out.reshape(B, Ho, Wo, Cout)          # stays NHWC, no transpose back


# ----------------------------------------------------------------------------
# Critic: parameters + forward
# ----------------------------------------------------------------------------
def init_critic_params(key, i_dim, h_dim):
    layer_dims = [
        (h_dim, i_dim),
        (h_dim * 2, h_dim),
        (h_dim * 4, h_dim * 2),
        (1, h_dim * 4),
    ]
    params = []
    for co, ci in layer_dims:
        key, kw_, kb_ = jax.random.split(key, 3)
        w = 0.05 * jax.random.normal(kw_, (co, ci, 4, 4), jnp.float32)
        b = 0.01 * jax.random.normal(kb_, (co,), jnp.float32)
        params.append((w, b))
    return params


def critic_forward(params, x):
    (w1, b1), (w2, b2), (w3, b3), (w4, b4) = params
    h = jnp.transpose(x, (0, 2, 3, 1))           # NCHW -> NHWC, once
    h = conv2d_lrelu_pallas(h, w1, b1, stride=2, padding=1, negative_slope=0.2)
    h = conv2d_lrelu_pallas(h, w2, b2, stride=2, padding=1, negative_slope=0.2)
    h = conv2d_lrelu_pallas(h, w3, b3, stride=2, padding=1, negative_slope=0.2)
    h = conv2d_lrelu_pallas(h, w4, b4, stride=1, padding=0, negative_slope=None)
    return jnp.squeeze(h)  # matches PyTorch .squeeze(): (B,1,1,1) -> (B,)


# ----------------------------------------------------------------------------
# Pure-JAX reference (for correctness check)
# ----------------------------------------------------------------------------
def _ref_conv(x, w, b, stride, padding):
    y = jax.lax.conv_general_dilated(
        x, w, window_strides=(stride, stride),
        padding=[(padding, padding), (padding, padding)],
        dimension_numbers=("NCHW", "OIHW", "NCHW"),
    )
    return y + b[None, :, None, None]


def critic_forward_ref(params, x):
    (w1, b1), (w2, b2), (w3, b3), (w4, b4) = params
    lrelu = lambda t: jnp.where(t >= 0.0, t, 0.2 * t)
    h = lrelu(_ref_conv(x, w1, b1, 2, 1))
    h = lrelu(_ref_conv(h, w2, b2, 2, 1))
    h = lrelu(_ref_conv(h, w3, b3, 2, 1))
    h = _ref_conv(h, w4, b4, 1, 0)
    return jnp.squeeze(h)


if __name__ == "__main__":
    key = jax.random.PRNGKey(0)
    k_param, k_x = jax.random.split(key)

    B, I_DIM, H_DIM, HW = 2, 3, 8, 32   # 32x32 -> 16 -> 8 -> 4 -> 1x1
    params = init_critic_params(k_param, I_DIM, H_DIM)
    x = jax.random.normal(k_x, (B, I_DIM, HW, HW), jnp.float32)

    fwd = jax.jit(critic_forward)
    out = jax.block_until_ready(fwd(params, x))

    ref = jax.block_until_ready(critic_forward_ref(params, x))
    np.testing.assert_allclose(np.asarray(out), np.asarray(ref),
                               rtol=5e-2, atol=1e-2)
    assert out.shape == (B,)

    print("KERNEL_OK")
</pallas_src>

<mosaic_0001>
module attributes {stable_mosaic.version = 11 : i64} {
  func.func @_matmul_bias_act_kernel(%arg0: i32, %arg1: i32, %arg2: i32, %arg3: memref<512x128xbf16, #tpu.memory_space<vmem>>, %arg4: memref<128x128xbf16, #tpu.memory_space<vmem>>, %arg5: memref<1x128xf32, #tpu.memory_space<vmem>>, %arg6: memref<512x128xf32, #tpu.memory_space<vmem>>, %arg7: memref<512x128xf32, #tpu.memory_space<vmem>>) attributes {dimension_semantics = [#tpu.dimension_semantics<parallel>, #tpu.dimension_semantics<parallel>, #tpu.dimension_semantics<arbitrary>], iteration_bounds = array<i64: 1, 1, 1>, scalar_prefetch = 0 : i64, scratch_operands = 1 : i64, tpu.core_type = #tpu.core_type<tc>, window_params = [{transform_indices = @transform_0, window_bounds = array<i64: 512, 128>}, {transform_indices = @transform_1, window_bounds = array<i64: 128, 128>}, {transform_indices = @transform_2, window_bounds = array<i64: 1, 128>}, {transform_indices = @transform_3, window_bounds = array<i64: 512, 128>}]} {
    %c0_i32 = arith.constant 0 : i32
    %0 = arith.cmpi eq, %arg2, %c0_i32 : i32
    %1 = arith.extui %0 : i1 to i32
    %c0_i32_0 = arith.constant 0 : i32
    %2 = arith.cmpi ne, %1, %c0_i32_0 : i32
    scf.if %2 {
      %cst_10 = arith.constant 0.000000e+00 : f32
      %12 = vector.broadcast %cst_10 : f32 to vector<512x128xf32>
      %c0_11 = arith.constant 0 : index
      %c0_12 = arith.constant 0 : index
      %13 = vector.load %arg7[%c0_11, %c0_12] : memref<512x128xf32, #tpu.memory_space<vmem>>, vector<512x128xf32>
      tpu.vector_store %arg7[%c0_11, %c0_12], %12 {strides = array<i32>} : memref<512x128xf32, #tpu.memory_space<vmem>>, vector<512x128xf32>,
    } else {
    }
    %c0 = arith.constant 0 : index
    %c0_1 = arith.constant 0 : index
    %3 = vector.load %arg7[%c0, %c0_1] : memref<512x128xf32, #tpu.memory_space<vmem>>, vector<512x128xf32>
    %c0_2 = arith.constant 0 : index
    %c0_3 = arith.constant 0 : index
    %4 = vector.load %arg3[%c0_2, %c0_3] : memref<512x128xbf16, #tpu.memory_space<vmem>>, vector<512x128xbf16>
    %c0_4 = arith.constant 0 : index
    %c0_5 = arith.constant 0 : index
    %5 = vector.load %arg4[%c0_4, %c0_5] : memref<128x128xbf16, #tpu.memory_space<vmem>>, vector<128x128xbf16>
    %cst = arith.constant dense<0.000000e+00> : vector<512x128xf32>
    %6 = tpu.matmul %4, %5, %cst {dimension_numbers = #tpu.dot_dimension_numbers<[1], [0], [0], [1], [0, 0, 1, 1], [], []>} : vector<512x128xbf16>, vector<128x128xbf16>, vector<512x128xf32> -> vector<512x128xf32>
    %7 = arith.addf %3, %6 : vector<512x128xf32>
    %c0_6 = arith.constant 0 : index
    %c0_7 = arith.constant 0 : index
    %8 = vector.load %arg7[%c0_6, %c0_7] : memref<512x128xf32, #tpu.memory_space<vmem>>, vector<512x128xf32>
    tpu.vector_store %arg7[%c0_6, %c0_7], %7 {strides = array<i32>} : memref<512x128xf32, #tpu.memory_space<vmem>>, vector<512x128xf32>,
    %c0_i32_8 = arith.constant 0 : i32
    %9 = arith.cmpi eq, %arg2, %c0_i32_8 : i32
    %10 = arith.extui %9 : i1 to i32
    %c0_i32_9 = arith.constant 0 : i32
    %11 = arith.cmpi ne, %10, %c0_i32_9 : i32
    scf.if %11 {
      %c0_10 = arith.constant 0 : index
      %c0_11 = arith.constant 0 : index
      %12 = vector.load %arg7[%c0_10, %c0_11] : memref<512x128xf32, #tpu.memory_space<vmem>>, vector<512x128xf32>
      %c0_12 = arith.constant 0 : index
      %c0_13 = arith.constant 0 : index
      %13 = vector.load %arg5[%c0_12, %c0_13] : memref<1x128xf32, #tpu.memory_space<vmem>>, vector<1x128xf32>
      %14 = vector.broadcast %13 : vector<1x128xf32> to vector<512x128xf32>
      %15 = arith.addf %12, %14 : vector<512x128xf32>
      %cst_14 = arith.constant 0.000000e+00 : f32
      %16 = vector.broadcast %cst_14 : f32 to vector<512x128xf32>
      %17 = arith.cmpf oge, %15, %16 : vector<512x128xf32>
      %cst_15 = arith.constant 2.000000e-01 : f32
      %18 = vector.broadcast %cst_15 : f32 to vector<512x128xf32>
      %19 = arith.mulf %18, %15 : vector<512x128xf32>
      %20 = arith.select %17, %15, %19 : vector<512x128xi1>, vector<512x128xf32>
      %c0_16 = arith.constant 0 : index
      %c0_17 = arith.constant 0 : index
      %21 = vector.load %arg6[%c0_16, %c0_17] : memref<512x128xf32, #tpu.memory_space<vmem>>, vector<512x128xf32>
      tpu.vector_store %arg6[%c0_16, %c0_17], %20 {strides = array<i32>} : memref<512x128xf32, #tpu.memory_space<vmem>>, vector<512x128xf32>,
    } else {
    }
    return
  }
  func.func @transform_0(%arg0: i32, %arg1: i32, %arg2: i32) -> (i32, i32) {
    %c0_i32 = arith.constant 0 : i32
    return %arg0, %arg2 : i32, i32
  }
  func.func @transform_1(%arg0: i32, %arg1: i32, %arg2: i32) -> (i32, i32) {
    %c0_i32 = arith.constant 0 : i32
    return %arg2, %arg1 : i32, i32
  }
  func.func @transform_2(%arg0: i32, %arg1: i32, %arg2: i32) -> (i32, i32) {
    %c0_i32 = arith.constant 0 : i32
    %c0_i32_0 = arith.constant 0 : i32
    return %c0_i32, %arg1 : i32, i32
  }
  func.func @transform_3(%arg0: i32, %arg1: i32, %arg2: i32) -> (i32, i32) {
    %c0_i32 = arith.constant 0 : i32
    return %arg0, %arg1 : i32, i32
  }
}

module attributes {stable_mosaic.version = 11 : i64} {
  func.func @_matmul_bias_act_kernel(%arg0: i32, %arg1: i32, %arg2: i32, %arg3: memref<128x128xbf16, #tpu.memory_space<vmem>>, %arg4: memref<128x128xbf16, #tpu.memory_space<vmem>>, %arg5: memref<1x128xf32, #tpu.memory_space<vmem>>, %arg6: memref<128x128xf32, #tpu.memory_space<vmem>>, %arg7: memref<128x128xf32, #tpu.memory_space<vmem>>) attributes {dimension_semantics = [#tpu.dimension_semantics<parallel>, #tpu.dimension_semantics<parallel>, #tpu.dimension_semantics<arbitrary>], iteration_bounds = array<i64: 1, 1, 1>, scalar_prefetch = 0 : i64, scratch_operands = 1 : i64, tpu.core_type = #tpu.core_type<tc>, window_params = [{transform_indices = @transform_0, window_bounds = array<i64: 128, 128>}, {transform_indices = @transform_1, window_bounds = array<i64: 128, 128>}, {transform_indices = @transform_2, window_bounds = array<i64: 1, 128>}, {transform_indices = @transform_3, window_bounds = array<i64: 128, 128>}]} {
    %c0_i32 = arith.constant 0 : i32
    %0 = arith.cmpi eq, %arg2, %c0_i32 : i32
    %1 = arith.extui %0 : i1 to i32
    %c0_i32_0 = arith.constant 0 : i32
    %2 = arith.cmpi ne, %1, %c0_i32_0 : i32
    scf.if %2 {
      %cst_10 = arith.constant 0.000000e+00 : f32
      %12 = vector.broadcast %cst_10 : f32 to vector<128x128xf32>
      %c0_11 = arith.constant 0 : index
      %c0_12 = arith.constant 0 : index
      %13 = vector.load %arg7[%c0_11, %c0_12] : memref<128x128xf32, #tpu.memory_space<vmem>>, vector<128x128xf32>
      tpu.vector_store %arg7[%c0_11, %c0_12], %12 {strides = array<i32>} : memref<128x128xf32, #tpu.memory_space<vmem>>, vector<128x128xf32>,
    } else {
    }
    %c0 = arith.constant 0 : index
    %c0_1 = arith.constant 0 : index
    %3 = vector.load %arg7[%c0, %c0_1] : memref<128x128xf32, #tpu.memory_space<vmem>>, vector<128x128xf32>
    %c0_2 = arith.constant 0 : index
    %c0_3 = arith.constant 0 : index
    %4 = vector.load %arg3[%c0_2, %c0_3] : memref<128x128xbf16, #tpu.memory_space<vmem>>, vector<128x128xbf16>
    %c0_4 = arith.constant 0 : index
    %c0_5 = arith.constant 0 : index
    %5 = vector.load %arg4[%c0_4, %c0_5] : memref<128x128xbf16, #tpu.memory_space<vmem>>, vector<128x128xbf16>
    %cst = arith.constant dense<0.000000e+00> : vector<128x128xf32>
    %6 = tpu.matmul %4, %5, %cst {dimension_numbers = #tpu.dot_dimension_numbers<[1], [0], [0], [1], [0, 0, 1, 1], [], []>} : vector<128x128xbf16>, vector<128x128xbf16>, vector<128x128xf32> -> vector<128x128xf32>
    %7 = arith.addf %3, %6 : vector<128x128xf32>
    %c0_6 = arith.constant 0 : index
    %c0_7 = arith.constant 0 : index
    %8 = vector.load %arg7[%c0_6, %c0_7] : memref<128x128xf32, #tpu.memory_space<vmem>>, vector<128x128xf32>
    tpu.vector_store %arg7[%c0_6, %c0_7], %7 {strides = array<i32>} : memref<128x128xf32, #tpu.memory_space<vmem>>, vector<128x128xf32>,
    %c0_i32_8 = arith.constant 0 : i32
    %9 = arith.cmpi eq, %arg2, %c0_i32_8 : i32
    %10 = arith.extui %9 : i1 to i32
    %c0_i32_9 = arith.constant 0 : i32
    %11 = arith.cmpi ne, %10, %c0_i32_9 : i32
    scf.if %11 {
      %c0_10 = arith.constant 0 : index
      %c0_11 = arith.constant 0 : index
      %12 = vector.load %arg7[%c0_10, %c0_11] : memref<128x128xf32, #tpu.memory_space<vmem>>, vector<128x128xf32>
      %c0_12 = arith.constant 0 : index
      %c0_13 = arith.constant 0 : index
      %13 = vector.load %arg5[%c0_12, %c0_13] : memref<1x128xf32, #tpu.memory_space<vmem>>, vector<1x128xf32>
      %14 = vector.broadcast %13 : vector<1x128xf32> to vector<128x128xf32>
      %15 = arith.addf %12, %14 : vector<128x128xf32>
      %cst_14 = arith.constant 0.000000e+00 : f32
      %16 = vector.broadcast %cst_14 : f32 to vector<128x128xf32>
      %17 = arith.cmpf oge, %15, %16 : vector<128x128xf32>
      %cst_15 = arith.constant 2.000000e-01 : f32
      %18 = vector.broadcast %cst_15 : f32 to vector<128x128xf32>
      %19 = arith.mulf %18, %15 : vector<128x128xf32>
      %20 = arith.select %17, %15, %19 : vector<128x128xi1>, vector<128x128xf32>
      %c0_16 = arith.constant 0 : index
      %c0_17 = arith.constant 0 : index
      %21 = vector.load %arg6[%c0_16, %c0_17] : memref<128x128xf32, #tpu.memory_space<vmem>>, vector<128x128xf32>
      tpu.vector_store %arg6[%c0_16, %c0_17], %20 {strides = array<i32>} : memref<128x128xf32, #tpu.memory_space<vmem>>, vector<128x128xf32>,
    } else {
    }
    return
  }
  func.func @transform_0(%arg0: i32, %arg1: i32, %arg2: i32) -> (i32, i32) {
    %c0_i32 = arith.constant 0 : i32
    return %arg0, %arg2 : i32, i32
  }
  func.func @transform_1(%arg0: i32, %arg1: i32, %arg2: i32) -> (i32, i32) {
    %c0_i32 = arith.constant 0 : i32
    return %arg2, %arg1 : i32, i32
  }
  func.func @transform_2(%arg0: i32, %arg1: i32, %arg2: i32) -> (i32, i32) {
    %c0_i32 = arith.constant 0 : i32
    %c0_i32_0 = arith.constant 0 : i32
    return %c0_i32, %arg1 : i32, i32
  }
  func.func @transform_3(%arg0: i32, %arg1: i32, %arg2: i32) -> (i32, i32) {
    %c0_i32 = arith.constant 0 : i32
    return %arg0, %arg1 : i32, i32
  }
}

module attributes {stable_mosaic.version = 11 : i64} {
  func.func @_matmul_bias_act_kernel(%arg0: i32, %arg1: i32, %arg2: i32, %arg3: memref<32x256xbf16, #tpu.memory_space<vmem>>, %arg4: memref<256x128xbf16, #tpu.memory_space<vmem>>, %arg5: memref<1x128xf32, #tpu.memory_space<vmem>>, %arg6: memref<32x128xf32, #tpu.memory_space<vmem>>, %arg7: memref<32x128xf32, #tpu.memory_space<vmem>>) attributes {dimension_semantics = [#tpu.dimension_semantics<parallel>, #tpu.dimension_semantics<parallel>, #tpu.dimension_semantics<arbitrary>], iteration_bounds = array<i64: 1, 1, 1>, scalar_prefetch = 0 : i64, scratch_operands = 1 : i64, tpu.core_type = #tpu.core_type<tc>, window_params = [{transform_indices = @transform_0, window_bounds = array<i64: 32, 256>}, {transform_indices = @transform_1, window_bounds = array<i64: 256, 128>}, {transform_indices = @transform_2, window_bounds = array<i64: 1, 128>}, {transform_indices = @transform_3, window_bounds = array<i64: 32, 128>}]} {
    %c0_i32 = arith.constant 0 : i32
    %0 = arith.cmpi eq, %arg2, %c0_i32 : i32
    %1 = arith.extui %0 : i1 to i32
    %c0_i32_0 = arith.constant 0 : i32
    %2 = arith.cmpi ne, %1, %c0_i32_0 : i32
    scf.if %2 {
      %cst_10 = arith.constant 0.000000e+00 : f32
      %12 = vector.broadcast %cst_10 : f32 to vector<32x128xf32>
      %c0_11 = arith.constant 0 : index
      %c0_12 = arith.constant 0 : index
      %13 = vector.load %arg7[%c0_11, %c0_12] : memref<32x128xf32, #tpu.memory_space<vmem>>, vector<32x128xf32>
      tpu.vector_store %arg7[%c0_11, %c0_12], %12 {strides = array<i32>} : memref<32x128xf32, #tpu.memory_space<vmem>>, vector<32x128xf32>,
    } else {
    }
    %c0 = arith.constant 0 : index
    %c0_1 = arith.constant 0 : index
    %3 = vector.load %arg7[%c0, %c0_1] : memref<32x128xf32, #tpu.memory_space<vmem>>, vector<32x128xf32>
    %c0_2 = arith.constant 0 : index
    %c0_3 = arith.constant 0 : index
    %4 = vector.load %arg3[%c0_2, %c0_3] : memref<32x256xbf16, #tpu.memory_space<vmem>>, vector<32x256xbf16>
    %c0_4 = arith.constant 0 : index
    %c0_5 = arith.constant 0 : index
    %5 = vector.load %arg4[%c0_4, %c0_5] : memref<256x128xbf16, #tpu.memory_space<vmem>>, vector<256x128xbf16>
    %cst = arith.constant dense<0.000000e+00> : vector<32x128xf32>
    %6 = tpu.matmul %4, %5, %cst {dimension_numbers = #tpu.dot_dimension_numbers<[1], [0], [0], [1], [0, 0, 1, 1], [], []>} : vector<32x256xbf16>, vector<256x128xbf16>, vector<32x128xf32> -> vector<32x128xf32>
    %7 = arith.addf %3, %6 : vector<32x128xf32>
    %c0_6 = arith.constant 0 : index
    %c0_7 = arith.constant 0 : index
    %8 = vector.load %arg7[%c0_6, %c0_7] : memref<32x128xf32, #tpu.memory_space<vmem>>, vector<32x128xf32>
    tpu.vector_store %arg7[%c0_6, %c0_7], %7 {strides = array<i32>} : memref<32x128xf32, #tpu.memory_space<vmem>>, vector<32x128xf32>,
    %c0_i32_8 = arith.constant 0 : i32
    %9 = arith.cmpi eq, %arg2, %c0_i32_8 : i32
    %10 = arith.extui %9 : i1 to i32
    %c0_i32_9 = arith.constant 0 : i32
    %11 = arith.cmpi ne, %10, %c0_i32_9 : i32
    scf.if %11 {
      %c0_10 = arith.constant 0 : index
      %c0_11 = arith.constant 0 : index
      %12 = vector.load %arg7[%c0_10, %c0_11] : memref<32x128xf32, #tpu.memory_space<vmem>>, vector<32x128xf32>
      %c0_12 = arith.constant 0 : index
      %c0_13 = arith.constant 0 : index
      %13 = vector.load %arg5[%c0_12, %c0_13] : memref<1x128xf32, #tpu.memory_space<vmem>>, vector<1x128xf32>
      %14 = vector.broadcast %13 : vector<1x128xf32> to vector<32x128xf32>
      %15 = arith.addf %12, %14 : vector<32x128xf32>
      %cst_14 = arith.constant 0.000000e+00 : f32
      %16 = vector.broadcast %cst_14 : f32 to vector<32x128xf32>
      %17 = arith.cmpf oge, %15, %16 : vector<32x128xf32>
      %cst_15 = arith.constant 2.000000e-01 : f32
      %18 = vector.broadcast %cst_15 : f32 to vector<32x128xf32>
      %19 = arith.mulf %18, %15 : vector<32x128xf32>
      %20 = arith.select %17, %15, %19 : vector<32x128xi1>, vector<32x128xf32>
      %c0_16 = arith.constant 0 : index
      %c0_17 = arith.constant 0 : index
      %21 = vector.load %arg6[%c0_16, %c0_17] : memref<32x128xf32, #tpu.memory_space<vmem>>, vector<32x128xf32>
      tpu.vector_store %arg6[%c0_16, %c0_17], %20 {strides = array<i32>} : memref<32x128xf32, #tpu.memory_space<vmem>>, vector<32x128xf32>,
    } else {
    }
    return
  }
  func.func @transform_0(%arg0: i32, %arg1: i32, %arg2: i32) -> (i32, i32) {
    %c0_i32 = arith.constant 0 : i32
    return %arg0, %arg2 : i32, i32
  }
  func.func @transform_1(%arg0: i32, %arg1: i32, %arg2: i32) -> (i32, i32) {
    %c0_i32 = arith.constant 0 : i32
    return %arg2, %arg1 : i32, i32
  }
  func.func @transform_2(%arg0: i32, %arg1: i32, %arg2: i32) -> (i32, i32) {
    %c0_i32 = arith.constant 0 : i32
    %c0_i32_0 = arith.constant 0 : i32
    return %c0_i32, %arg1 : i32, i32
  }
  func.func @transform_3(%arg0: i32, %arg1: i32, %arg2: i32) -> (i32, i32) {
    %c0_i32 = arith.constant 0 : i32
    return %arg0, %arg1 : i32, i32
  }
}

module attributes {stable_mosaic.version = 11 : i64} {
  func.func @_matmul_bias_act_kernel(%arg0: i32, %arg1: i32, %arg2: i32, %arg3: memref<16x512xbf16, #tpu.memory_space<vmem>>, %arg4: memref<512x128xbf16, #tpu.memory_space<vmem>>, %arg5: memref<1x128xf32, #tpu.memory_space<vmem>>, %arg6: memref<16x128xf32, #tpu.memory_space<vmem>>, %arg7: memref<16x128xf32, #tpu.memory_space<vmem>>) attributes {dimension_semantics = [#tpu.dimension_semantics<parallel>, #tpu.dimension_semantics<parallel>, #tpu.dimension_semantics<arbitrary>], iteration_bounds = array<i64: 1, 1, 1>, scalar_prefetch = 0 : i64, scratch_operands = 1 : i64, tpu.core_type = #tpu.core_type<tc>, window_params = [{transform_indices = @transform_0, window_bounds = array<i64: 16, 512>}, {transform_indices = @transform_1, window_bounds = array<i64: 512, 128>}, {transform_indices = @transform_2, window_bounds = array<i64: 1, 128>}, {transform_indices = @transform_3, window_bounds = array<i64: 16, 128>}]} {
    %c0_i32 = arith.constant 0 : i32
    %0 = arith.cmpi eq, %arg2, %c0_i32 : i32
    %1 = arith.extui %0 : i1 to i32
    %c0_i32_0 = arith.constant 0 : i32
    %2 = arith.cmpi ne, %1, %c0_i32_0 : i32
    scf.if %2 {
      %cst_10 = arith.constant 0.000000e+00 : f32
      %12 = vector.broadcast %cst_10 : f32 to vector<16x128xf32>
      %c0_11 = arith.constant 0 : index
      %c0_12 = arith.constant 0 : index
      %13 = vector.load %arg7[%c0_11, %c0_12] : memref<16x128xf32, #tpu.memory_space<vmem>>, vector<16x128xf32>
      tpu.vector_store %arg7[%c0_11, %c0_12], %12 {strides = array<i32>} : memref<16x128xf32, #tpu.memory_space<vmem>>, vector<16x128xf32>,
    } else {
    }
    %c0 = arith.constant 0 : index
    %c0_1 = arith.constant 0 : index
    %3 = vector.load %arg7[%c0, %c0_1] : memref<16x128xf32, #tpu.memory_space<vmem>>, vector<16x128xf32>
    %c0_2 = arith.constant 0 : index
    %c0_3 = arith.constant 0 : index
    %4 = vector.load %arg3[%c0_2, %c0_3] : memref<16x512xbf16, #tpu.memory_space<vmem>>, vector<16x512xbf16>
    %c0_4 = arith.constant 0 : index
    %c0_5 = arith.constant 0 : index
    %5 = vector.load %arg4[%c0_4, %c0_5] : memref<512x128xbf16, #tpu.memory_space<vmem>>, vector<512x128xbf16>
    %cst = arith.constant dense<0.000000e+00> : vector<16x128xf32>
    %6 = tpu.matmul %4, %5, %cst {dimension_numbers = #tpu.dot_dimension_numbers<[1], [0], [0], [1], [0, 0, 1, 1], [], []>} : vector<16x512xbf16>, vector<512x128xbf16>, vector<16x128xf32> -> vector<16x128xf32>
    %7 = arith.addf %3, %6 : vector<16x128xf32>
    %c0_6 = arith.constant 0 : index
    %c0_7 = arith.constant 0 : index
    %8 = vector.load %arg7[%c0_6, %c0_7] : memref<16x128xf32, #tpu.memory_space<vmem>>, vector<16x128xf32>
    tpu.vector_store %arg7[%c0_6, %c0_7], %7 {strides = array<i32>} : memref<16x128xf32, #tpu.memory_space<vmem>>, vector<16x128xf32>,
    %c0_i32_8 = arith.constant 0 : i32
    %9 = arith.cmpi eq, %arg2, %c0_i32_8 : i32
    %10 = arith.extui %9 : i1 to i32
    %c0_i32_9 = arith.constant 0 : i32
    %11 = arith.cmpi ne, %10, %c0_i32_9 : i32
    scf.if %11 {
      %c0_10 = arith.constant 0 : index
      %c0_11 = arith.constant 0 : index
      %12 = vector.load %arg7[%c0_10, %c0_11] : memref<16x128xf32, #tpu.memory_space<vmem>>, vector<16x128xf32>
      %c0_12 = arith.constant 0 : index
      %c0_13 = arith.constant 0 : index
      %13 = vector.load %arg5[%c0_12, %c0_13] : memref<1x128xf32, #tpu.memory_space<vmem>>, vector<1x128xf32>
      %14 = vector.broadcast %13 : vector<1x128xf32> to vector<16x128xf32>
      %15 = arith.addf %12, %14 : vector<16x128xf32>
      %c0_14 = arith.constant 0 : index
      %c0_15 = arith.constant 0 : index
      %16 = vector.load %arg6[%c0_14, %c0_15] : memref<16x128xf32, #tpu.memory_space<vmem>>, vector<16x128xf32>
      tpu.vector_store %arg6[%c0_14, %c0_15], %15 {strides = array<i32>} : memref<16x128xf32, #tpu.memory_space<vmem>>, vector<16x128xf32>,
    } else {
    }
    return
  }
  func.func @transform_0(%arg0: i32, %arg1: i32, %arg2: i32) -> (i32, i32) {
    %c0_i32 = arith.constant 0 : i32
    return %arg0, %arg2 : i32, i32
  }
  func.func @transform_1(%arg0: i32, %arg1: i32, %arg2: i32) -> (i32, i32) {
    %c0_i32 = arith.constant 0 : i32
    return %arg2, %arg1 : i32, i32
  }
  func.func @transform_2(%arg0: i32, %arg1: i32, %arg2: i32) -> (i32, i32) {
    %c0_i32 = arith.constant 0 : i32
    %c0_i32_0 = arith.constant 0 : i32
    return %c0_i32, %arg1 : i32, i32
  }
  func.func @transform_3(%arg0: i32, %arg1: i32, %arg2: i32) -> (i32, i32) {
    %c0_i32 = arith.constant 0 : i32
    return %arg0, %arg1 : i32, i32
  }
}

</mosaic_0001>

<bundles_post_ra>
// kernel: critic_forward.4
= control target key start
LH: loop header
LB: loop body
LE: loop exit
PB: predicated region body
PF: predicated region fallthrough
CT: control target
= control target key end

     0   :  { %8 = vsyncpa [#allocation4], 0  ;;  %s1804_s0 = inlined_call_operand.hbm [shape: bf16[512,128], index: 0, kind: input, shape index: {}]   ;;  %s1805_s1 = inlined_call_operand.hbm [shape: bf16[128,128], index: 1, kind: input, shape index: {}]   ;;  %s1806_s2 = inlined_call_operand.hbm [shape: f32[1,128], index: 2, kind: input, shape index: {}]   ;;  %s1807_s3 = inlined_call_operand.hbm [shape: f32[512,128], index: 3, kind: output, shape index: {}]  }
   0x1   :  { %9 = vsyncpa [#allocation7], 0 }
   0x2   :  { %10 = vsyncpa [#allocation5], 0  ;;  %s1655_s12 = smov [#allocation6]   ;;  %s1656_s14 = smov [#allocation3]  }
   0x3   :  { %s28_s13 = sshll.u32 %s1655_s12, 4  ;;  %s16_s15 = sshll.u32 %s1656_s14, 4  ;;  %s29_s13 = int_to_ptr.vmem [resolvable:$true] %s28_s13  ;;  %s1683_s15 = int_to_ptr.vmem [resolvable:$true] %s16_s15 }
   0x4   :  { %s1561_s18 = scalar_lea.hbm %s1805_s1, 1024 }
   0x5   :  { %p1562_p0 = scmp.ne.s32.totalorder %s1805_s1, %s1561_s18  ;;  %p1565_p1 = scmp.lt.u32.totalorder %s1561_s18, %s1805_s1 }
   0x7   :  { %p1567_p2 = pnand %p1565_p1, %p1562_p0 }
   0x9   :  { %1570 = shalt.err (!%p1567_p2)
}
   0xa   :  { %s1571_s23 = scalar_lea.vmem %s29_s13, 1024  ;;  %p1576_p4 = scmp.lt.s32.totalorder %s29_s13, %s29_s13 }
   0xb   :  { %p1572_p3 = scmp.ne.s32.totalorder %s29_s13, %s1571_s23  ;;  %p1577_p5 = scmp.lt.s32.totalorder %s1571_s23, %s1571_s23 }
   0xd   :  { %p1578_p6 = por %p1577_p5, %p1576_p4 }
   0xf   :  { %p1579_p7 = pnand %p1578_p6, %p1572_p3 }
  0x11   :  { %1582 = shalt.err (!%p1579_p7)
}
  0x12   :  { %s1657_s24 = smov 64   ;;  %s1658_s25 = smov 4  }
  0x13   :  { %34 = dma.hbm_to_vmem [thread:$0]  %s1805_s1, 1024, %s29_s13, [#allocation7], %s1657_s24, %s1657_s24, %s1658_s25  }
  0x14   :  { %s1583_s30 = scalar_lea.hbm %s1804_s0, 4096 }
  0x15   :  { %p1584_p8 = scmp.ne.s32.totalorder %s1804_s0, %s1583_s30  ;;  %p1587_p9 = scmp.lt.u32.totalorder %s1583_s30, %s1804_s0 }
  0x17   :  { %p1589_p10 = pnand %p1587_p9, %p1584_p8 }
  0x19   :  { %1592 = shalt.err (!%p1589_p10)
}
  0x1a   :  { %s1593_s8 = scalar_lea.vmem %s1683_s15, 4096  ;;  %p1598_p12 = scmp.lt.s32.totalorder %s1683_s15, %s1683_s15 }
  0x1b   :  { %p1594_p11 = scmp.ne.s32.totalorder %s1683_s15, %s1593_s8  ;;  %p1599_p13 = scmp.lt.s32.totalorder %s1593_s8, %s1593_s8 }
  0x1d   :  { %p1600_p0 = por %p1599_p13, %p1598_p12 }
  0x1f   :  { %p1601_p1 = pnand %p1600_p0, %p1594_p11 }
  0x21   :  { %1604 = shalt.err (!%p1601_p1)
}
  0x22   :  { %22 = dma.hbm_to_vmem [thread:$0]  %s1804_s0, 4096, %s1683_s15, [#allocation4], %s1657_s24, %s1657_s24, %s1658_s25  }
  0x23   :  { %s1659_s10 = smov [#allocation8]   ;;  %s1605_s14 = scalar_lea.hbm %s1806_s2, 16 }
  0x24   :  { %s41_s11 = sshll.u32 %s1659_s10, 4  ;;  %p1606_p2 = scmp.ne.s32.totalorder %s1806_s2, %s1605_s14  ;;  %s42_s11 = int_to_ptr.vmem [resolvable:$true] %s41_s11 }
  0x25   :  { %p1609_p3 = scmp.lt.u32.totalorder %s1605_s14, %s1806_s2 }
  0x27   :  { %p1611_p4 = pnand %p1609_p3, %p1606_p2 }
  0x29   :  { %1614 = shalt.err (!%p1611_p4)
}
  0x2a   :  { %s1615_s20 = scalar_lea.vmem %s42_s11, 16  ;;  %s1619_s0 = scalar_lea.vmem %s42_s11, 32 }
  0x2b   :  { %p1616_p5 = scmp.ne.s32.totalorder %s42_s11, %s1615_s20  ;;  %p1620_p6 = scmp.lt.s32.totalorder %s42_s11, %s42_s11 }
  0x2c   :  { %p1621_p7 = scmp.lt.s32.totalorder %s1619_s0, %s1615_s20 }
  0x2e   :  { %p1622_p8 = por %p1621_p7, %p1620_p6 }
  0x30   :  { %p1623_p9 = pnand %p1622_p8, %p1616_p5 }
  0x32   :  { %1626 = shalt.err (!%p1623_p9)
}
  0x33   :  { %44 = dma.hbm_to_vmem [thread:$0]  %s1806_s2, 16, %s42_s11, [#allocation7]  }
  0x34   :  { %1649 = dma.done.wait [#allocation4], 4096  }
  0x35   :  { %1650 = vsyncadd [#allocation4], 4294963200 }
  0x36   :  { %1651 = dma.done.wait [#allocation7], 1040  }
  0x37   :  { %1652 = vsyncadd [#allocation7], 4294966256  ;;  %v1521_v0 = vld [vmem:[#allocation6] sm:$0xff]   ;;  %v1522_v1 = vld [vmem:[#allocation6 + $0x8] sm:$0xff]   ;;  %s1660_s2 = smov [#allocation9]  }
  0x38   :  { %1417 = vmatprep.subr.bf16.mxu0 %v1521_v0  ;;  %1497 = vmatprep.subr.bf16.mxu1 %v1521_v0  ;;  %v1523_v2 = vld [vmem:[#allocation6 + $0x10] sm:$0xff]   ;;  %v1524_v3 = vld [vmem:[#allocation6 + $0x18] sm:$0xff]   ;;  %v1529_v4 = vld [vmem:[#allocation3] sm:$0xff]   ;;  %s1323_s22 = sshll.u32 %s1660_s2, 4  ;;  %s1324_s22 = int_to_ptr.vmem [resolvable:$true] %s1323_s22 }
  0x39   :  { %1418 = vmatpush3.bf16.msra.mxu0 %v1521_v0  ;;  %1505 = vmatpush3.bf16.msra.mxu1 %v1521_v0  ;;  %v1530_v5 = vld [vmem:[#allocation3 + $0x80] sm:$0xff]   ;;  %v1526_v7 = vld [vmem:[#allocation6 + $0x28] sm:$0xff]   ;;  %v1527_v8 = vld [vmem:[#allocation6 + $0x30] sm:$0xff]   ;;  %s1627_s23 = scalar_lea.vmem %s1324_s22, 8192  ;;  %p1632_p11 = scmp.lt.s32.totalorder %s1324_s22, %s1324_s22 }
  0x3a   :  { %1419 = vmatprep.subr.bf16.mxu0 %v1522_v1  ;;  %1498 = vmatprep.subr.bf16.mxu1 %v1522_v1  ;;  %v1525_v6 = vld [vmem:[#allocation6 + $0x20] sm:$0xff]   ;;  %v1528_v9 = vld [vmem:[#allocation6 + $0x38] sm:$0xff]   ;;  %v1531_v10 = vld [vmem:[#allocation3 + $0x8] sm:$0xff]   ;;  %p1628_p10 = scmp.ne.s32.totalorder %s1324_s22, %s1627_s23  ;;  %p1633_p12 = scmp.lt.s32.totalorder %s1627_s23, %s1627_s23 }
  0x3b   :  { %1433 = vmatprep.mubr.bf16.mxu0 %v1529_v4  ;;  %1465 = vmatprep.mubr.bf16.mxu1 %v1530_v5  ;;  %v1532_v11 = vld [vmem:[#allocation3 + $0x88] sm:$0xff]   ;;  %v1533_v12 = vld [vmem:[#allocation3 + $0x10] sm:$0xff]   ;;  %v1535_v14 = vld [vmem:[#allocation3 + $0x18] sm:$0xff]  }
  0x3c   :  { %v1534_v13 = vld [vmem:[#allocation3 + $0x90] sm:$0xff]   ;;  %v1536_v15 = vld [vmem:[#allocation3 + $0x98] sm:$0xff]   ;;  %v1537_v16 = vld [vmem:[#allocation3 + $0x20] sm:$0xff]   ;;  %p1634_p13 = por %p1633_p12, %p1632_p11 }
  0x3d   :  { %1420 = vmatpush3.bf16.msra.mxu0 %v1522_v1  ;;  %1506 = vmatpush3.bf16.msra.mxu1 %v1522_v1  ;;  %v1538_v17 = vld [vmem:[#allocation3 + $0xa0] sm:$0xff]   ;;  %v1539_v18 = vld [vmem:[#allocation3 + $0x28] sm:$0xff]   ;;  %v1541_v20 = vld [vmem:[#allocation3 + $0x30] sm:$0xff]  }
  0x3e   :  { %1421 = vmatprep.subr.bf16.mxu0 %v1523_v2  ;;  %1499 = vmatprep.subr.bf16.mxu1 %v1523_v2  ;;  %v1540_v19 = vld [vmem:[#allocation3 + $0xa8] sm:$0xff]   ;;  %v1542_v21 = vld [vmem:[#allocation3 + $0xb0] sm:$0xff]   ;;  %v1543_v22 = vld [vmem:[#allocation3 + $0x38] sm:$0xff]   ;;  %p1635_p0 = pnand %p1634_p13, %p1628_p10 }
  0x3f   :  { %v1544_v23 = vld [vmem:[#allocation3 + $0xb8] sm:$0xff]   ;;  %v1545_v24 = vld [vmem:[#allocation3 + $0x40] sm:$0xff]   ;;  %v1547_v26 = vld [vmem:[#allocation3 + $0x48] sm:$0xff]  }
  0x40   :  { %v1546_v25 = vld [vmem:[#allocation3 + $0xc0] sm:$0xff]   ;;  %v1548_v27 = vld [vmem:[#allocation3 + $0xc8] sm:$0xff]   ;;  %v1549_v28 = vld [vmem:[#allocation3 + $0x50] sm:$0xff]  }
  0x41   :  { %1422 = vmatpush3.bf16.msra.mxu0 %v1523_v2  ;;  %1507 = vmatpush3.bf16.msra.mxu1 %v1523_v2  ;;  %v1550_v29 = vld [vmem:[#allocation3 + $0xd0] sm:$0xff]   ;;  %v1551_v30 = vld [vmem:[#allocation3 + $0x58] sm:$0xff]   ;;  %v1553_v32 = vld [vmem:[#allocation3 + $0x60] sm:$0xff]  }
  0x42   :  { %1423 = vmatprep.subr.bf16.mxu0 %v1524_v3  ;;  %1500 = vmatprep.subr.bf16.mxu1 %v1524_v3  ;;  %v1552_v31 = vld [vmem:[#allocation3 + $0xd8] sm:$0xff]   ;;  %v1554_v33 = vld [vmem:[#allocation3 + $0xe0] sm:$0xff]   ;;  %v1555_v34 = vld [vmem:[#allocation3 + $0x68] sm:$0xff]  }
  0x43   :  { %v1556_v35 = vld [vmem:[#allocation3 + $0xe8] sm:$0xff]   ;;  %v1557_v36 = vld [vmem:[#allocation3 + $0x70] sm:$0xff]   ;;  %v1559_v38 = vld [vmem:[#allocation3 + $0x78] sm:$0xff]  }
  0x44   :  { %v1558_v37 = vld [vmem:[#allocation3 + $0xf0] sm:$0xff]   ;;  %v1560_v39 = vld [vmem:[#allocation3 + $0xf8] sm:$0xff]   ;;  %v1726_v40 = vld [vmem:[#allocation8] ss:$0 sm:$0xff] }
  0x45   :  { %1424 = vmatpush3.bf16.msra.mxu0 %v1524_v3  ;;  %1508 = vmatpush3.bf16.msra.mxu1 %v1524_v3 }
  0x46   :  { %1425 = vmatprep.subr.bf16.mxu0 %v1525_v6  ;;  %1501 = vmatprep.subr.bf16.mxu1 %v1525_v6 }
  0x49   :  { %1426 = vmatpush3.bf16.msra.mxu0 %v1525_v6  ;;  %1509 = vmatpush3.bf16.msra.mxu1 %v1525_v6 }
  0x4a   :  { %1427 = vmatprep.subr.bf16.mxu0 %v1526_v7  ;;  %1502 = vmatprep.subr.bf16.mxu1 %v1526_v7 }
  0x4d   :  { %1428 = vmatpush3.bf16.msra.mxu0 %v1526_v7  ;;  %1510 = vmatpush3.bf16.msra.mxu1 %v1526_v7 }
  0x4e   :  { %1429 = vmatprep.subr.bf16.mxu0 %v1527_v8  ;;  %1503 = vmatprep.subr.bf16.mxu1 %v1527_v8 }
  0x51   :  { %1430 = vmatpush3.bf16.msra.mxu0 %v1527_v8  ;;  %1511 = vmatpush3.bf16.msra.mxu1 %v1527_v8 }
  0x52   :  { %1431 = vmatprep.subr.bf16.mxu0 %v1528_v9  ;;  %1504 = vmatprep.subr.bf16.mxu1 %v1528_v9 }
  0x55   :  { %1432 = vmatpush3.bf16.msra.mxu0 %v1528_v9  ;;  %1512 = vmatpush3.bf16.msra.mxu1 %v1528_v9 }
  0x58   :  { %1434 = vmatmul.mubr.bf16.vlgmr.msra.gmra.mrb[0].mxu0 %v1531_v10  ;;  %1466 = vmatmul.mubr.bf16.vlgmr.msra.gmra.mrb[0].mxu1 %v1532_v11 }
  0x59   :  { %1437 = vmatprep.mubr.bf16.mxu0 %v1533_v12  ;;  %1469 = vmatprep.mubr.bf16.mxu1 %v1534_v13 }
  0x60   :  { %1438 = vmatmul.mubr.bf16.gmra.mrb[4].mxu0 %v1535_v14  ;;  %1470 = vmatmul.mubr.bf16.gmra.mrb[4].mxu1 %v1536_v15 }
  0x61   :  { %1441 = vmatprep.mubr.bf16.mxu0 %v1537_v16  ;;  %1473 = vmatprep.mubr.bf16.mxu1 %v1538_v17 }
  0x68   :  { %1442 = vmatmul.mubr.bf16.gmra.mrb[8].mxu0 %v1539_v18  ;;  %1474 = vmatmul.mubr.bf16.gmra.mrb[8].mxu1 %v1540_v19 }
  0x69   :  { %1445 = vmatprep.mubr.bf16.mxu0 %v1541_v20  ;;  %1477 = vmatprep.mubr.bf16.mxu1 %v1542_v21 }
  0x70   :  { %1446 = vmatmul.mubr.bf16.gmra.mrb[12].mxu0 %v1543_v22  ;;  %1478 = vmatmul.mubr.bf16.gmra.mrb[12].mxu1 %v1544_v23 }
  0x71   :  { %1449 = vmatprep.mubr.bf16.mxu0 %v1545_v24  ;;  %1481 = vmatprep.mubr.bf16.mxu1 %v1546_v25 }
  0x78   :  { %1450 = vmatmul.mubr.bf16.gmra.mrb[16].mxu0 %v1547_v26  ;;  %1482 = vmatmul.mubr.bf16.gmra.mrb[16].mxu1 %v1548_v27 }
  0x79   :  { %1453 = vmatprep.mubr.bf16.mxu0 %v1549_v28  ;;  %1485 = vmatprep.mubr.bf16.mxu1 %v1550_v29 }
  0x80   :  { %1454 = vmatmul.mubr.bf16.gmra.mrb[20].mxu0 %v1551_v30  ;;  %1486 = vmatmul.mubr.bf16.gmra.mrb[20].mxu1 %v1552_v31 }
  0x81   :  { %1457 = vmatprep.mubr.bf16.mxu0 %v1553_v32  ;;  %1489 = vmatprep.mubr.bf16.mxu1 %v1554_v33 }
  0x88   :  { %1458 = vmatmul.mubr.bf16.gmra.mrb[24].mxu0 %v1555_v34  ;;  %1490 = vmatmul.mubr.bf16.gmra.mrb[24].mxu1 %v1556_v35 }
  0x89   :  { %1461 = vmatprep.mubr.bf16.mxu0 %v1557_v36  ;;  %1493 = vmatprep.mubr.bf16.mxu1 %v1558_v37 }
  0x90   :  { %1462 = vmatmul.mubr.bf16.gmra.mrb[28].mxu0 %v1559_v38  ;;  %1494 = vmatmul.mubr.bf16.gmra.mrb[28].mxu1 %v1560_v39 }
 0x12b   :  { %v1435_v41 = vpop.f32.mrb[0].mxu0  ;;  %v1467_v42 = vpop.f32.mrb[0].mxu1 }
 0x12c   :  { %v1000_v43 = vadd.f32 %v1435_v41, %v1726_v40  ;;  %v1032_v44 = vadd.f32 %v1467_v42, %v1726_v40  ;;  %v541_v45 = vpop.f32.mrb[1].mxu0  ;;  %v669_v46 = vpop.f32.mrb[1].mxu1 }
 0x12d   :  { %v998_v47 = vadd.f32 %v1726_v40, %v541_v45  ;;  %v1030_v48 = vadd.f32 %v1726_v40, %v669_v46  ;;  %v1436_v49 = vpop.f32.mrb[2].mxu0  ;;  %v1468_v50 = vpop.f32.mrb[2].mxu1 }
 0x12e   :  { %vm1064_vm0 = vcmp.ge.f32.partialorder %v1000_v43, 0.0  ;;  %v1128_v51 = vmul.f32 0.2, %v1000_v43  ;;  %vm1096_vm1 = vcmp.ge.f32.partialorder %v1032_v44, 0.0  ;;  %v1160_v52 = vmul.f32 0.2, %v1032_v44 }
 0x12f   :  { %vm1062_vm2 = vcmp.ge.f32.partialorder %v998_v47, 0.0  ;;  %v1126_v53 = vmul.f32 0.2, %v998_v47  ;;  %vm1094_vm3 = vcmp.ge.f32.partialorder %v1030_v48, 0.0  ;;  %v1158_v54 = vmul.f32 0.2, %v1030_v48 }
 0x130   :  { %v1192_v55 = vsel %vm1064_vm0, %v1000_v43, %v1128_v51  ;;  %v1224_v56 = vsel %vm1096_vm1, %v1032_v44, %v1160_v52  ;;  %v1001_v57 = vadd.f32 %v1436_v49, %v1726_v40  ;;  %v1033_v58 = vadd.f32 %v1468_v50, %v1726_v40  ;;  %v544_v59 = vpop.f32.mrb[3].mxu0  ;;  %v672_v60 = vpop.f32.mrb[3].mxu1 }
 0x131   :  { %1256 = vst [vmem:[#allocation9 + $0x10] sm:$0xff] %v1192_v55  ;;  %1288 = vst [vmem:[#allocation9 + $0x110] sm:$0xff] %v1224_v56  ;;  %v1190_v61 = vsel %vm1062_vm2, %v998_v47, %v1126_v53  ;;  %v1222_v62 = vsel %vm1094_vm3, %v1030_v48, %v1158_v54  ;;  %v999_v63 = vadd.f32 %v1726_v40, %v544_v59 }
 0x132   :  { %v1031_v0 = vadd.f32 %v1726_v40, %v672_v60  ;;  %1254 = vst [vmem:[#allocation9] sm:$0xff] %v1190_v61  ;;  %1286 = vst [vmem:[#allocation9 + $0x100] sm:$0xff] %v1222_v62  ;;  %vm1065_vm4 = vcmp.ge.f32.partialorder %v1001_v57, 0.0  ;;  %v1129_v1 = vmul.f32 0.2, %v1001_v57  ;;  %vm1097_vm5 = vcmp.ge.f32.partialorder %v1033_v58, 0.0 }
 0x133   :  { %v1161_v2 = vmul.f32 0.2, %v1033_v58  ;;  %vm1063_vm6 = vcmp.ge.f32.partialorder %v999_v63, 0.0  ;;  %v1127_v3 = vmul.f32 0.2, %v999_v63  ;;  %v1439_v7 = vpop.f32.mrb[4].mxu0 }
 0x134   :  { %vm1095_vm7 = vcmp.ge.f32.partialorder %v1031_v0, 0.0  ;;  %v1159_v4 = vmul.f32 0.2, %v1031_v0  ;;  %v1193_v5 = vsel %vm1065_vm4, %v1001_v57, %v1129_v1  ;;  %v1471_v8 = vpop.f32.mrb[4].mxu1  ;;  %v1004_v11 = vadd.f32 %v1439_v7, %v1726_v40  ;;  %v557_v13 = vpop.f32.mrb[5].mxu0 }
 0x135   :  { %v1225_v6 = vsel %vm1097_vm5, %v1033_v58, %v1161_v2  ;;  %1257 = vst [vmem:[#allocation9 + $0x18] sm:$0xff] %v1193_v5  ;;  %v1191_v9 = vsel %vm1063_vm6, %v999_v63, %v1127_v3  ;;  %v1036_v12 = vadd.f32 %v1471_v8, %v1726_v40  ;;  %v685_v14 = vpop.f32.mrb[5].mxu1  ;;  %v1002_v15 = vadd.f32 %v1726_v40, %v557_v13  ;;  %v1440_v17 = vpop.f32.mrb[6].mxu0 }
 0x136   :  { %1289 = vst [vmem:[#allocation9 + $0x118] sm:$0xff] %v1225_v6  ;;  %v1223_v10 = vsel %vm1095_vm7, %v1031_v0, %v1159_v4  ;;  %1255 = vst [vmem:[#allocation9 + $0x8] sm:$0xff] %v1191_v9  ;;  %v1034_v16 = vadd.f32 %v1726_v40, %v685_v14  ;;  %v1472_v18 = vpop.f32.mrb[6].mxu1  ;;  %vm1068_vm8 = vcmp.ge.f32.partialorder %v1004_v11, 0.0  ;;  %v1132_v19 = vmul.f32 0.2, %v1004_v11 }
 0x137   :  { %1287 = vst [vmem:[#allocation9 + $0x108] sm:$0xff] %v1223_v10  ;;  %vm1100_vm9 = vcmp.ge.f32.partialorder %v1036_v12, 0.0  ;;  %v1164_v20 = vmul.f32 0.2, %v1036_v12  ;;  %vm1066_vm10 = vcmp.ge.f32.partialorder %v1002_v15, 0.0  ;;  %v1005_v25 = vadd.f32 %v1440_v17, %v1726_v40  ;;  %v560_v27 = vpop.f32.mrb[7].mxu0 }
 0x138   :  { %v1130_v21 = vmul.f32 0.2, %v1002_v15  ;;  %vm1098_vm11 = vcmp.ge.f32.partialorder %v1034_v16, 0.0  ;;  %v1162_v22 = vmul.f32 0.2, %v1034_v16  ;;  %v1196_v23 = vsel %vm1068_vm8, %v1004_v11, %v1132_v19  ;;  %v688_v28 = vpop.f32.mrb[7].mxu1 }
 0x139   :  { %v1228_v24 = vsel %vm1100_vm9, %v1036_v12, %v1164_v20  ;;  %v1037_v26 = vadd.f32 %v1472_v18, %v1726_v40  ;;  %1260 = vst [vmem:[#allocation9 + $0x30] sm:$0xff] %v1196_v23  ;;  %v1003_v31 = vadd.f32 %v1726_v40, %v560_v27  ;;  %v1035_v32 = vadd.f32 %v1726_v40, %v688_v28 }
 0x13a   :  { %1292 = vst [vmem:[#allocation9 + $0x130] sm:$0xff] %v1228_v24  ;;  %v1194_v29 = vsel %vm1066_vm10, %v1002_v15, %v1130_v21  ;;  %v1226_v30 = vsel %vm1098_vm11, %v1034_v16, %v1162_v22  ;;  %vm1069_vm12 = vcmp.ge.f32.partialorder %v1005_v25, 0.0  ;;  %v1133_v33 = vmul.f32 0.2, %v1005_v25 }
 0x13b   :  { %1258 = vst [vmem:[#allocation9 + $0x20] sm:$0xff] %v1194_v29  ;;  %1290 = vst [vmem:[#allocation9 + $0x120] sm:$0xff] %v1226_v30  ;;  %vm1101_vm13 = vcmp.ge.f32.partialorder %v1037_v26, 0.0  ;;  %v1165_v34 = vmul.f32 0.2, %v1037_v26  ;;  %vm1067_vm14 = vcmp.ge.f32.partialorder %v1003_v31, 0.0 }
 0x13c   :  { %v1131_v35 = vmul.f32 0.2, %v1003_v31  ;;  %vm1099_vm15 = vcmp.ge.f32.partialorder %v1035_v32, 0.0  ;;  %v1163_v36 = vmul.f32 0.2, %v1035_v32  ;;  %v1197_v37 = vsel %vm1069_vm12, %v1005_v25, %v1133_v33  ;;  %v1443_v39 = vpop.f32.mrb[8].mxu0 }
 0x13d   :  { %v1229_v38 = vsel %vm1101_vm13, %v1037_v26, %v1165_v34  ;;  %v1475_v41 = vpop.f32.mrb[8].mxu1  ;;  %1261 = vst [vmem:[#allocation9 + $0x38] sm:$0xff] %v1197_v37  ;;  %v1008_v44 = vadd.f32 %v1443_v39, %v1726_v40  ;;  %v573_v46 = vpop.f32.mrb[9].mxu0 }
 0x13e   :  { %1293 = vst [vmem:[#allocation9 + $0x138] sm:$0xff] %v1229_v38  ;;  %v1195_v42 = vsel %vm1067_vm14, %v1003_v31, %v1131_v35  ;;  %v1227_v43 = vsel %vm1099_vm15, %v1035_v32, %v1163_v36  ;;  %v1040_v45 = vadd.f32 %v1475_v41, %v1726_v40  ;;  %v701_v47 = vpop.f32.mrb[9].mxu1  ;;  %v1006_v48 = vadd.f32 %v1726_v40, %v573_v46  ;;  %v1444_v50 = vpop.f32.mrb[10].mxu0 }
 0x13f   :  { %1259 = vst [vmem:[#allocation9 + $0x28] sm:$0xff] %v1195_v42  ;;  %1291 = vst [vmem:[#allocation9 + $0x128] sm:$0xff] %v1227_v43  ;;  %v1038_v49 = vadd.f32 %v1726_v40, %v701_v47  ;;  %v1476_v51 = vpop.f32.mrb[10].mxu1  ;;  %vm1072_vm0 = vcmp.ge.f32.partialorder %v1008_v44, 0.0  ;;  %v1136_v52 = vmul.f32 0.2, %v1008_v44  ;;  %v1009_v58 = vadd.f32 %v1444_v50, %v1726_v40 }
 0x140   :  { %vm1104_vm1 = vcmp.ge.f32.partialorder %v1040_v45, 0.0  ;;  %v1168_v53 = vmul.f32 0.2, %v1040_v45  ;;  %vm1070_vm2 = vcmp.ge.f32.partialorder %v1006_v48, 0.0  ;;  %v1134_v54 = vmul.f32 0.2, %v1006_v48 }
 0x141   :  { %vm1102_vm3 = vcmp.ge.f32.partialorder %v1038_v49, 0.0  ;;  %v1166_v55 = vmul.f32 0.2, %v1038_v49  ;;  %v1200_v56 = vsel %vm1072_vm0, %v1008_v44, %v1136_v52  ;;  %v1041_v59 = vadd.f32 %v1476_v51, %v1726_v40  ;;  %v576_v60 = vpop.f32.mrb[11].mxu0  ;;  %v704_v61 = vpop.f32.mrb[11].mxu1 }
 0x142   :  { %v1232_v57 = vsel %vm1104_vm1, %v1040_v45, %v1168_v53  ;;  %1264 = vst [vmem:[#allocation9 + $0x50] sm:$0xff] %v1200_v56  ;;  %v1198_v62 = vsel %vm1070_vm2, %v1006_v48, %v1134_v54  ;;  %v1007_v0 = vadd.f32 %v1726_v40, %v576_v60  ;;  %v1039_v1 = vadd.f32 %v1726_v40, %v704_v61 }
 0x143   :  { %1296 = vst [vmem:[#allocation9 + $0x150] sm:$0xff] %v1232_v57  ;;  %v1230_v63 = vsel %vm1102_vm3, %v1038_v49, %v1166_v55  ;;  %v1447_v2 = vpop.f32.mrb[12].mxu0  ;;  %v1479_v3 = vpop.f32.mrb[12].mxu1  ;;  %1262 = vst [vmem:[#allocation9 + $0x40] sm:$0xff] %v1198_v62  ;;  %vm1073_vm4 = vcmp.ge.f32.partialorder %v1009_v58, 0.0  ;;  %vm1105_vm5 = vcmp.ge.f32.partialorder %v1041_v59, 0.0 }
 0x144   :  { %1294 = vst [vmem:[#allocation9 + $0x140] sm:$0xff] %v1230_v63  ;;  %v1137_v4 = vmul.f32 0.2, %v1009_v58  ;;  %v1169_v5 = vmul.f32 0.2, %v1041_v59  ;;  %vm1071_vm6 = vcmp.ge.f32.partialorder %v1007_v0, 0.0  ;;  %v1012_v10 = vadd.f32 %v1447_v2, %v1726_v40 }
 0x145   :  { %v1135_v6 = vmul.f32 0.2, %v1007_v0  ;;  %vm1103_vm7 = vcmp.ge.f32.partialorder %v1039_v1, 0.0  ;;  %v1167_v7 = vmul.f32 0.2, %v1039_v1  ;;  %v1044_v11 = vadd.f32 %v1479_v3, %v1726_v40  ;;  %v589_v12 = vpop.f32.mrb[13].mxu0 }
 0x146   :  { %v1201_v8 = vsel %vm1073_vm4, %v1009_v58, %v1137_v4  ;;  %v1233_v9 = vsel %vm1105_vm5, %v1041_v59, %v1169_v5  ;;  %v717_v13 = vpop.f32.mrb[13].mxu1  ;;  %v1010_v16 = vadd.f32 %v1726_v40, %v589_v12  ;;  %v1448_v18 = vpop.f32.mrb[14].mxu0  ;;  %vm1076_vm8 = vcmp.ge.f32.partialorder %v1012_v10, 0.0 }
 0x147   :  { %1265 = vst [vmem:[#allocation9 + $0x58] sm:$0xff] %v1201_v8  ;;  %1297 = vst [vmem:[#allocation9 + $0x158] sm:$0xff] %v1233_v9  ;;  %v1199_v14 = vsel %vm1071_vm6, %v1007_v0, %v1135_v6  ;;  %v1231_v15 = vsel %vm1103_vm7, %v1039_v1, %v1167_v7  ;;  %v1042_v17 = vadd.f32 %v1726_v40, %v717_v13  ;;  %v1480_v19 = vpop.f32.mrb[14].mxu1  ;;  %v1140_v20 = vmul.f32 0.2, %v1012_v10  ;;  %v592_v28 = vpop.f32.mrb[15].mxu0 }
 0x148   :  { %1263 = vst [vmem:[#allocation9 + $0x48] sm:$0xff] %v1199_v14  ;;  %1295 = vst [vmem:[#allocation9 + $0x148] sm:$0xff] %v1231_v15  ;;  %vm1108_vm9 = vcmp.ge.f32.partialorder %v1044_v11, 0.0  ;;  %v1172_v21 = vmul.f32 0.2, %v1044_v11  ;;  %vm1074_vm10 = vcmp.ge.f32.partialorder %v1010_v16, 0.0  ;;  %v1013_v26 = vadd.f32 %v1448_v18, %v1726_v40 }
 0x149   :  { %v1138_v22 = vmul.f32 0.2, %v1010_v16  ;;  %vm1106_vm11 = vcmp.ge.f32.partialorder %v1042_v17, 0.0  ;;  %v1170_v23 = vmul.f32 0.2, %v1042_v17  ;;  %v1204_v24 = vsel %vm1076_vm8, %v1012_v10, %v1140_v20  ;;  %v720_v29 = vpop.f32.mrb[15].mxu1 }
 0x14a   :  { %v1236_v25 = vsel %vm1108_vm9, %v1044_v11, %v1172_v21  ;;  %v1045_v27 = vadd.f32 %v1480_v19, %v1726_v40  ;;  %1268 = vst [vmem:[#allocation9 + $0x70] sm:$0xff] %v1204_v24  ;;  %v1011_v32 = vadd.f32 %v1726_v40, %v592_v28  ;;  %v1043_v33 = vadd.f32 %v1726_v40, %v720_v29 }
 0x14b   :  { %1300 = vst [vmem:[#allocation9 + $0x170] sm:$0xff] %v1236_v25  ;;  %v1202_v30 = vsel %vm1074_vm10, %v1010_v16, %v1138_v22  ;;  %v1234_v31 = vsel %vm1106_vm11, %v1042_v17, %v1170_v23  ;;  %v1451_v34 = vpop.f32.mrb[16].mxu0  ;;  %v1483_v35 = vpop.f32.mrb[16].mxu1  ;;  %vm1077_vm12 = vcmp.ge.f32.partialorder %v1013_v26, 0.0  ;;  %v1141_v36 = vmul.f32 0.2, %v1013_v26 }
 0x14c   :  { %1266 = vst [vmem:[#allocation9 + $0x60] sm:$0xff] %v1202_v30  ;;  %1298 = vst [vmem:[#allocation9 + $0x160] sm:$0xff] %v1234_v31  ;;  %vm1109_vm13 = vcmp.ge.f32.partialorder %v1045_v27, 0.0  ;;  %v1173_v37 = vmul.f32 0.2, %v1045_v27  ;;  %vm1075_vm14 = vcmp.ge.f32.partialorder %v1011_v32, 0.0  ;;  %v1016_v43 = vadd.f32 %v1451_v34, %v1726_v40 }
 0x14d   :  { %v1139_v38 = vmul.f32 0.2, %v1011_v32  ;;  %vm1107_vm15 = vcmp.ge.f32.partialorder %v1043_v33, 0.0  ;;  %v1171_v39 = vmul.f32 0.2, %v1043_v33  ;;  %v1205_v41 = vsel %vm1077_vm12, %v1013_v26, %v1141_v36  ;;  %v605_v45 = vpop.f32.mrb[17].mxu0 }
 0x14e   :  { %v1237_v42 = vsel %vm1109_vm13, %v1045_v27, %v1173_v37  ;;  %v1048_v44 = vadd.f32 %v1483_v35, %v1726_v40  ;;  %v733_v46 = vpop.f32.mrb[17].mxu1  ;;  %1269 = vst [vmem:[#allocation9 + $0x78] sm:$0xff] %v1205_v41  ;;  %v1014_v49 = vadd.f32 %v1726_v40, %v605_v45  ;;  %v1452_v51 = vpop.f32.mrb[18].mxu0  ;;  %vm1080_vm0 = vcmp.ge.f32.partialorder %v1016_v43, 0.0 }
 0x14f   :  { %1301 = vst [vmem:[#allocation9 + $0x178] sm:$0xff] %v1237_v42  ;;  %v1203_v47 = vsel %vm1075_vm14, %v1011_v32, %v1139_v38  ;;  %v1235_v48 = vsel %vm1107_vm15, %v1043_v33, %v1171_v39  ;;  %v1046_v50 = vadd.f32 %v1726_v40, %v733_v46  ;;  %v1484_v52 = vpop.f32.mrb[18].mxu1  ;;  %v1144_v53 = vmul.f32 0.2, %v1016_v43  ;;  %v608_v61 = vpop.f32.mrb[19].mxu0 }
 0x150   :  { %1267 = vst [vmem:[#allocation9 + $0x68] sm:$0xff] %v1203_v47  ;;  %1299 = vst [vmem:[#allocation9 + $0x168] sm:$0xff] %v1235_v48  ;;  %vm1112_vm1 = vcmp.ge.f32.partialorder %v1048_v44, 0.0  ;;  %v1176_v54 = vmul.f32 0.2, %v1048_v44  ;;  %vm1078_vm2 = vcmp.ge.f32.partialorder %v1014_v49, 0.0  ;;  %v1017_v59 = vadd.f32 %v1452_v51, %v1726_v40 }
 0x151   :  { %v1142_v55 = vmul.f32 0.2, %v1014_v49  ;;  %vm1110_vm3 = vcmp.ge.f32.partialorder %v1046_v50, 0.0  ;;  %v1174_v56 = vmul.f32 0.2, %v1046_v50  ;;  %v1208_v57 = vsel %vm1080_vm0, %v1016_v43, %v1144_v53  ;;  %v736_v62 = vpop.f32.mrb[19].mxu1 }
 0x152   :  { %v1240_v58 = vsel %vm1112_vm1, %v1048_v44, %v1176_v54  ;;  %v1049_v60 = vadd.f32 %v1484_v52, %v1726_v40  ;;  %1272 = vst [vmem:[#allocation9 + $0x90] sm:$0xff] %v1208_v57  ;;  %v1015_v1 = vadd.f32 %v1726_v40, %v608_v61  ;;  %v1047_v2 = vadd.f32 %v1726_v40, %v736_v62 }
 0x153   :  { %1304 = vst [vmem:[#allocation9 + $0x190] sm:$0xff] %v1240_v58  ;;  %v1206_v63 = vsel %vm1078_vm2, %v1014_v49, %v1142_v55  ;;  %v1238_v0 = vsel %vm1110_vm3, %v1046_v50, %v1174_v56  ;;  %v1455_v3 = vpop.f32.mrb[20].mxu0  ;;  %v1487_v4 = vpop.f32.mrb[20].mxu1  ;;  %vm1081_vm4 = vcmp.ge.f32.partialorder %v1017_v59, 0.0  ;;  %v1145_v5 = vmul.f32 0.2, %v1017_v59 }
 0x154   :  { %1270 = vst [vmem:[#allocation9 + $0x80] sm:$0xff] %v1206_v63  ;;  %1302 = vst [vmem:[#allocation9 + $0x180] sm:$0xff] %v1238_v0  ;;  %vm1113_vm5 = vcmp.ge.f32.partialorder %v1049_v60, 0.0  ;;  %v1177_v6 = vmul.f32 0.2, %v1049_v60  ;;  %vm1079_vm6 = vcmp.ge.f32.partialorder %v1015_v1, 0.0  ;;  %v1020_v11 = vadd.f32 %v1455_v3, %v1726_v40 }
 0x155   :  { %v1143_v7 = vmul.f32 0.2, %v1015_v1  ;;  %vm1111_vm7 = vcmp.ge.f32.partialorder %v1047_v2, 0.0  ;;  %v1175_v8 = vmul.f32 0.2, %v1047_v2  ;;  %v1209_v9 = vsel %vm1081_vm4, %v1017_v59, %v1145_v5  ;;  %v621_v13 = vpop.f32.mrb[21].mxu0 }
 0x156   :  { %v1241_v10 = vsel %vm1113_vm5, %v1049_v60, %v1177_v6  ;;  %v1052_v12 = vadd.f32 %v1487_v4, %v1726_v40  ;;  %v749_v14 = vpop.f32.mrb[21].mxu1  ;;  %1273 = vst [vmem:[#allocation9 + $0x98] sm:$0xff] %v1209_v9  ;;  %v1018_v17 = vadd.f32 %v1726_v40, %v621_v13  ;;  %v1456_v19 = vpop.f32.mrb[22].mxu0  ;;  %vm1084_vm8 = vcmp.ge.f32.partialorder %v1020_v11, 0.0 }
 0x157   :  { %1305 = vst [vmem:[#allocation9 + $0x198] sm:$0xff] %v1241_v10  ;;  %v1207_v15 = vsel %vm1079_vm6, %v1015_v1, %v1143_v7  ;;  %v1239_v16 = vsel %vm1111_vm7, %v1047_v2, %v1175_v8  ;;  %v1050_v18 = vadd.f32 %v1726_v40, %v749_v14  ;;  %v1488_v20 = vpop.f32.mrb[22].mxu1  ;;  %v1148_v21 = vmul.f32 0.2, %v1020_v11  ;;  %v624_v29 = vpop.f32.mrb[23].mxu0 }
 0x158   :  { %1271 = vst [vmem:[#allocation9 + $0x88] sm:$0xff] %v1207_v15  ;;  %1303 = vst [vmem:[#allocation9 + $0x188] sm:$0xff] %v1239_v16  ;;  %vm1116_vm9 = vcmp.ge.f32.partialorder %v1052_v12, 0.0  ;;  %v1180_v22 = vmul.f32 0.2, %v1052_v12  ;;  %vm1082_vm10 = vcmp.ge.f32.partialorder %v1018_v17, 0.0  ;;  %v1021_v27 = vadd.f32 %v1456_v19, %v1726_v40 }
 0x159   :  { %v1146_v23 = vmul.f32 0.2, %v1018_v17  ;;  %vm1114_vm11 = vcmp.ge.f32.partialorder %v1050_v18, 0.0  ;;  %v1178_v24 = vmul.f32 0.2, %v1050_v18  ;;  %v1212_v25 = vsel %vm1084_vm8, %v1020_v11, %v1148_v21  ;;  %v752_v30 = vpop.f32.mrb[23].mxu1 }
 0x15a   :  { %v1244_v26 = vsel %vm1116_vm9, %v1052_v12, %v1180_v22  ;;  %v1053_v28 = vadd.f32 %v1488_v20, %v1726_v40  ;;  %1276 = vst [vmem:[#allocation9 + $0xb0] sm:$0xff] %v1212_v25  ;;  %v1019_v33 = vadd.f32 %v1726_v40, %v624_v29  ;;  %v1051_v34 = vadd.f32 %v1726_v40, %v752_v30 }
 0x15b   :  { %1308 = vst [vmem:[#allocation9 + $0x1b0] sm:$0xff] %v1244_v26  ;;  %v1210_v31 = vsel %vm1082_vm10, %v1018_v17, %v1146_v23  ;;  %v1242_v32 = vsel %vm1114_vm11, %v1050_v18, %v1178_v24  ;;  %v1459_v35 = vpop.f32.mrb[24].mxu0  ;;  %v1491_v36 = vpop.f32.mrb[24].mxu1  ;;  %vm1085_vm12 = vcmp.ge.f32.partialorder %v1021_v27, 0.0  ;;  %v1149_v37 = vmul.f32 0.2, %v1021_v27 }
 0x15c   :  { %1274 = vst [vmem:[#allocation9 + $0xa0] sm:$0xff] %v1210_v31  ;;  %1306 = vst [vmem:[#allocation9 + $0x1a0] sm:$0xff] %v1242_v32  ;;  %vm1117_vm13 = vcmp.ge.f32.partialorder %v1053_v28, 0.0  ;;  %v1181_v38 = vmul.f32 0.2, %v1053_v28  ;;  %vm1083_vm14 = vcmp.ge.f32.partialorder %v1019_v33, 0.0  ;;  %v1024_v44 = vadd.f32 %v1459_v35, %v1726_v40 }
 0x15d   :  { %v1147_v39 = vmul.f32 0.2, %v1019_v33  ;;  %vm1115_vm15 = vcmp.ge.f32.partialorder %v1051_v34, 0.0  ;;  %v1179_v41 = vmul.f32 0.2, %v1051_v34  ;;  %v1213_v42 = vsel %vm1085_vm12, %v1021_v27, %v1149_v37  ;;  %v637_v46 = vpop.f32.mrb[25].mxu0 }
 0x15e   :  { %v1245_v43 = vsel %vm1117_vm13, %v1053_v28, %v1181_v38  ;;  %v1056_v45 = vadd.f32 %v1491_v36, %v1726_v40  ;;  %v765_v47 = vpop.f32.mrb[25].mxu1  ;;  %1277 = vst [vmem:[#allocation9 + $0xb8] sm:$0xff] %v1213_v42  ;;  %v1022_v50 = vadd.f32 %v1726_v40, %v637_v46  ;;  %v1460_v52 = vpop.f32.mrb[26].mxu0  ;;  %vm1088_vm0 = vcmp.ge.f32.partialorder %v1024_v44, 0.0 }
 0x15f   :  { %1309 = vst [vmem:[#allocation9 + $0x1b8] sm:$0xff] %v1245_v43  ;;  %v1211_v48 = vsel %vm1083_vm14, %v1019_v33, %v1147_v39  ;;  %v1243_v49 = vsel %vm1115_vm15, %v1051_v34, %v1179_v41  ;;  %v1054_v51 = vadd.f32 %v1726_v40, %v765_v47  ;;  %v1492_v53 = vpop.f32.mrb[26].mxu1  ;;  %v1152_v54 = vmul.f32 0.2, %v1024_v44  ;;  %v640_v62 = vpop.f32.mrb[27].mxu0 }
 0x160   :  { %1275 = vst [vmem:[#allocation9 + $0xa8] sm:$0xff] %v1211_v48  ;;  %1307 = vst [vmem:[#allocation9 + $0x1a8] sm:$0xff] %v1243_v49  ;;  %vm1120_vm1 = vcmp.ge.f32.partialorder %v1056_v45, 0.0  ;;  %v1184_v55 = vmul.f32 0.2, %v1056_v45  ;;  %vm1086_vm2 = vcmp.ge.f32.partialorder %v1022_v50, 0.0  ;;  %v1025_v60 = vadd.f32 %v1460_v52, %v1726_v40 }
 0x161   :  { %v1150_v56 = vmul.f32 0.2, %v1022_v50  ;;  %vm1118_vm3 = vcmp.ge.f32.partialorder %v1054_v51, 0.0  ;;  %v1182_v57 = vmul.f32 0.2, %v1054_v51  ;;  %v1216_v58 = vsel %vm1088_vm0, %v1024_v44, %v1152_v54  ;;  %v768_v63 = vpop.f32.mrb[27].mxu1 }
 0x162   :  { %v1248_v59 = vsel %vm1120_vm1, %v1056_v45, %v1184_v55  ;;  %v1057_v61 = vadd.f32 %v1492_v53, %v1726_v40  ;;  %1280 = vst [vmem:[#allocation9 + $0xd0] sm:$0xff] %v1216_v58  ;;  %v1023_v2 = vadd.f32 %v1726_v40, %v640_v62  ;;  %v1055_v3 = vadd.f32 %v1726_v40, %v768_v63 }
 0x163   :  { %1312 = vst [vmem:[#allocation9 + $0x1d0] sm:$0xff] %v1248_v59  ;;  %v1214_v0 = vsel %vm1086_vm2, %v1022_v50, %v1150_v56  ;;  %v1246_v1 = vsel %vm1118_vm3, %v1054_v51, %v1182_v57  ;;  %v1463_v4 = vpop.f32.mrb[28].mxu0  ;;  %v1495_v5 = vpop.f32.mrb[28].mxu1  ;;  %vm1089_vm4 = vcmp.ge.f32.partialorder %v1025_v60, 0.0  ;;  %v1153_v6 = vmul.f32 0.2, %v1025_v60 }
 0x164   :  { %1278 = vst [vmem:[#allocation9 + $0xc0] sm:$0xff] %v1214_v0  ;;  %1310 = vst [vmem:[#allocation9 + $0x1c0] sm:$0xff] %v1246_v1  ;;  %vm1121_vm5 = vcmp.ge.f32.partialorder %v1057_v61, 0.0  ;;  %v1185_v7 = vmul.f32 0.2, %v1057_v61  ;;  %vm1087_vm6 = vcmp.ge.f32.partialorder %v1023_v2, 0.0  ;;  %v1028_v12 = vadd.f32 %v1463_v4, %v1726_v40 }
 0x165   :  { %v1151_v8 = vmul.f32 0.2, %v1023_v2  ;;  %vm1119_vm7 = vcmp.ge.f32.partialorder %v1055_v3, 0.0  ;;  %v1183_v9 = vmul.f32 0.2, %v1055_v3  ;;  %v1217_v10 = vsel %vm1089_vm4, %v1025_v60, %v1153_v6  ;;  %v653_v14 = vpop.f32.mrb[29].mxu0 }
 0x166   :  { %v1249_v11 = vsel %vm1121_vm5, %v1057_v61, %v1185_v7  ;;  %v1060_v13 = vadd.f32 %v1495_v5, %v1726_v40  ;;  %v781_v15 = vpop.f32.mrb[29].mxu1  ;;  %1281 = vst [vmem:[#allocation9 + $0xd8] sm:$0xff] %v1217_v10  ;;  %v1026_v18 = vadd.f32 %v1726_v40, %v653_v14  ;;  %v1464_v20 = vpop.f32.mrb[30].mxu0  ;;  %vm1092_vm8 = vcmp.ge.f32.partialorder %v1028_v12, 0.0 }
 0x167   :  { %1313 = vst [vmem:[#allocation9 + $0x1d8] sm:$0xff] %v1249_v11  ;;  %v1215_v16 = vsel %vm1087_vm6, %v1023_v2, %v1151_v8  ;;  %v1247_v17 = vsel %vm1119_vm7, %v1055_v3, %v1183_v9  ;;  %v1058_v19 = vadd.f32 %v1726_v40, %v781_v15  ;;  %v1496_v21 = vpop.f32.mrb[30].mxu1  ;;  %v1156_v22 = vmul.f32 0.2, %v1028_v12  ;;  %v656_v30 = vpop.f32.mrb[31].mxu0 }
 0x168   :  { %1279 = vst [vmem:[#allocation9 + $0xc8] sm:$0xff] %v1215_v16  ;;  %1311 = vst [vmem:[#allocation9 + $0x1c8] sm:$0xff] %v1247_v17  ;;  %vm1124_vm9 = vcmp.ge.f32.partialorder %v1060_v13, 0.0  ;;  %v1188_v23 = vmul.f32 0.2, %v1060_v13  ;;  %vm1090_vm10 = vcmp.ge.f32.partialorder %v1026_v18, 0.0  ;;  %v1029_v28 = vadd.f32 %v1464_v20, %v1726_v40 }
 0x169   :  { %v1154_v24 = vmul.f32 0.2, %v1026_v18  ;;  %vm1122_vm11 = vcmp.ge.f32.partialorder %v1058_v19, 0.0  ;;  %v1186_v25 = vmul.f32 0.2, %v1058_v19  ;;  %v1220_v26 = vsel %vm1092_vm8, %v1028_v12, %v1156_v22  ;;  %v784_v31 = vpop.f32.mrb[31].mxu1 }
 0x16a   :  { %v1252_v27 = vsel %vm1124_vm9, %v1060_v13, %v1188_v23  ;;  %v1061_v29 = vadd.f32 %v1496_v21, %v1726_v40  ;;  %1284 = vst [vmem:[#allocation9 + $0xf0] sm:$0xff] %v1220_v26  ;;  %v1027_v34 = vadd.f32 %v1726_v40, %v656_v30  ;;  %v1059_v35 = vadd.f32 %v1726_v40, %v784_v31 }
 0x16b   :  { %1316 = vst [vmem:[#allocation9 + $0x1f0] sm:$0xff] %v1252_v27  ;;  %v1218_v32 = vsel %vm1090_vm10, %v1026_v18, %v1154_v24  ;;  %v1250_v33 = vsel %vm1122_vm11, %v1058_v19, %v1186_v25  ;;  %vm1093_vm12 = vcmp.ge.f32.partialorder %v1029_v28, 0.0  ;;  %v1157_v36 = vmul.f32 0.2, %v1029_v28 }
 0x16c   :  { %1282 = vst [vmem:[#allocation9 + $0xe0] sm:$0xff] %v1218_v32  ;;  %1314 = vst [vmem:[#allocation9 + $0x1e0] sm:$0xff] %v1250_v33  ;;  %vm1125_vm13 = vcmp.ge.f32.partialorder %v1061_v29, 0.0  ;;  %v1189_v37 = vmul.f32 0.2, %v1061_v29  ;;  %vm1091_vm14 = vcmp.ge.f32.partialorder %v1027_v34, 0.0 }
 0x16d   :  { %v1155_v38 = vmul.f32 0.2, %v1027_v34  ;;  %vm1123_vm15 = vcmp.ge.f32.partialorder %v1059_v35, 0.0  ;;  %v1187_v39 = vmul.f32 0.2, %v1059_v35  ;;  %v1221_v41 = vsel %vm1093_vm12, %v1029_v28, %v1157_v36 }
 0x16e   :  { %v1253_v42 = vsel %vm1125_vm13, %v1061_v29, %v1189_v37  ;;  %1285 = vst [vmem:[#allocation9 + $0xf8] sm:$0xff] %v1221_v41 }
 0x16f   :  { %1317 = vst [vmem:[#allocation9 + $0x1f8] sm:$0xff] %v1253_v42  ;;  %v1219_v43 = vsel %vm1091_vm14, %v1027_v34, %v1155_v38  ;;  %v1251_v44 = vsel %vm1123_vm15, %v1059_v35, %v1187_v39 }
 0x170   :  { %1283 = vst [vmem:[#allocation9 + $0xe8] sm:$0xff] %v1219_v43  ;;  %1315 = vst [vmem:[#allocation9 + $0x1e8] sm:$0xff] %v1251_v44 }
 0x171   :  { %1638 = shalt.err (!%p1635_p0)
}
 0x172   :  { %s1639_s26 = scalar_lea.hbm %s1807_s3, 8192 }
 0x173   :  { %p1640_p1 = scmp.ne.s32.totalorder %s1807_s3, %s1639_s26  ;;  %p1643_p2 = scmp.lt.u32.totalorder %s1639_s26, %s1807_s3 }
 0x175   :  { %p1645_p3 = pnand %p1643_p2, %p1640_p1 }
 0x177   :  { %1648 = shalt.err (!%p1645_p3)
}
 0x178   :  { %s1661_s4 = smov 128   ;;  %s1662_s5 = smov 8  }
 0x179   :  { %1329 = dma.vmem_to_hbm [thread:$0]  %s1324_s22, 8192, %s1807_s3, [#allocation5], %s1661_s4, %s1661_s4, %s1662_s5  }
 0x17a   :  { %1653 = dma.done.wait [#allocation5], 8192  }
 0x17b   :  { %1654 = vsyncadd [#allocation5], 4294959104 }
 0x17c   :  { %1333 = vsyncpa [#allocation4], 1 }
 0x17d   :  { %1334 = vsyncpa [#allocation7], 1 }
 0x17e   :  { %1335 = vsyncpa [#allocation5], 1 }

// kernel: critic_forward.5
= control target key start
LH: loop header
LB: loop body
LE: loop exit
PB: predicated region body
PF: predicated region fallthrough
CT: control target
= control target key end

     0   :  { %8 = vsyncpa [#allocation4], 0  ;;  %s772_s0 = inlined_call_operand.hbm [shape: bf16[128,128], index: 0, kind: input, shape index: {}]   ;;  %s773_s1 = inlined_call_operand.hbm [shape: bf16[128,128], index: 1, kind: input, shape index: {}]   ;;  %s774_s2 = inlined_call_operand.hbm [shape: f32[1,128], index: 2, kind: input, shape index: {}]   ;;  %s775_s3 = inlined_call_operand.hbm [shape: f32[128,128], index: 3, kind: output, shape index: {}]  }
   0x1   :  { %9 = vsyncpa [#allocation7], 0 }
   0x2   :  { %10 = vsyncpa [#allocation5], 0  ;;  %s671_s12 = smov [#allocation6]   ;;  %s672_s14 = smov [#allocation3]  }
   0x3   :  { %s28_s13 = sshll.u32 %s671_s12, 4  ;;  %s16_s15 = sshll.u32 %s672_s14, 4  ;;  %s29_s13 = int_to_ptr.vmem [resolvable:$true] %s28_s13  ;;  %s699_s15 = int_to_ptr.vmem [resolvable:$true] %s16_s15 }
   0x4   :  { %s577_s18 = scalar_lea.hbm %s773_s1, 1024 }
   0x5   :  { %p578_p0 = scmp.ne.s32.totalorder %s773_s1, %s577_s18  ;;  %p581_p1 = scmp.lt.u32.totalorder %s577_s18, %s773_s1 }
   0x7   :  { %p583_p2 = pnand %p581_p1, %p578_p0 }
   0x9   :  { %586 = shalt.err (!%p583_p2)
}
   0xa   :  { %s587_s23 = scalar_lea.vmem %s29_s13, 1024  ;;  %p592_p4 = scmp.lt.s32.totalorder %s29_s13, %s29_s13 }
   0xb   :  { %p588_p3 = scmp.ne.s32.totalorder %s29_s13, %s587_s23  ;;  %p593_p5 = scmp.lt.s32.totalorder %s587_s23, %s587_s23 }
   0xd   :  { %p594_p6 = por %p593_p5, %p592_p4 }
   0xf   :  { %p595_p7 = pnand %p594_p6, %p588_p3 }
  0x11   :  { %598 = shalt.err (!%p595_p7)
}
  0x12   :  { %s673_s24 = smov 64   ;;  %s674_s25 = smov 4  }
  0x13   :  { %34 = dma.hbm_to_vmem [thread:$0]  %s773_s1, 1024, %s29_s13, [#allocation7], %s673_s24, %s673_s24, %s674_s25  }
  0x14   :  { %s599_s30 = scalar_lea.hbm %s772_s0, 1024 }
  0x15   :  { %p600_p8 = scmp.ne.s32.totalorder %s772_s0, %s599_s30  ;;  %p603_p9 = scmp.lt.u32.totalorder %s599_s30, %s772_s0 }
  0x17   :  { %p605_p10 = pnand %p603_p9, %p600_p8 }
  0x19   :  { %608 = shalt.err (!%p605_p10)
}
  0x1a   :  { %s609_s8 = scalar_lea.vmem %s699_s15, 1024  ;;  %p614_p12 = scmp.lt.s32.totalorder %s699_s15, %s699_s15 }
  0x1b   :  { %p610_p11 = scmp.ne.s32.totalorder %s699_s15, %s609_s8  ;;  %p615_p13 = scmp.lt.s32.totalorder %s609_s8, %s609_s8 }
  0x1d   :  { %p616_p0 = por %p615_p13, %p614_p12 }
  0x1f   :  { %p617_p1 = pnand %p616_p0, %p610_p11 }
  0x21   :  { %620 = shalt.err (!%p617_p1)
}
  0x22   :  { %22 = dma.hbm_to_vmem [thread:$0]  %s772_s0, 1024, %s699_s15, [#allocation4], %s673_s24, %s673_s24, %s674_s25  }
  0x23   :  { %s675_s10 = smov [#allocation8]   ;;  %s621_s14 = scalar_lea.hbm %s774_s2, 16 }
  0x24   :  { %s41_s11 = sshll.u32 %s675_s10, 4  ;;  %p622_p2 = scmp.ne.s32.totalorder %s774_s2, %s621_s14  ;;  %s42_s11 = int_to_ptr.vmem [resolvable:$true] %s41_s11 }
  0x25   :  { %p625_p3 = scmp.lt.u32.totalorder %s621_s14, %s774_s2 }
  0x27   :  { %p627_p4 = pnand %p625_p3, %p622_p2 }
  0x29   :  { %630 = shalt.err (!%p627_p4)
}
  0x2a   :  { %s631_s20 = scalar_lea.vmem %s42_s11, 16  ;;  %s635_s0 = scalar_lea.vmem %s42_s11, 32 }
  0x2b   :  { %p632_p5 = scmp.ne.s32.totalorder %s42_s11, %s631_s20  ;;  %p636_p6 = scmp.lt.s32.totalorder %s42_s11, %s42_s11 }
  0x2c   :  { %p637_p7 = scmp.lt.s32.totalorder %s635_s0, %s631_s20 }
  0x2e   :  { %p638_p8 = por %p637_p7, %p636_p6 }
  0x30   :  { %p639_p9 = pnand %p638_p8, %p632_p5 }
  0x32   :  { %642 = shalt.err (!%p639_p9)
}
  0x33   :  { %44 = dma.hbm_to_vmem [thread:$0]  %s774_s2, 16, %s42_s11, [#allocation7]  }
  0x34   :  { %665 = dma.done.wait [#allocation4], 1024  }
  0x35   :  { %666 = vsyncadd [#allocation4], 4294966272 }
  0x36   :  { %667 = dma.done.wait [#allocation7], 1040  }
  0x37   :  { %668 = vsyncadd [#allocation7], 4294966256  ;;  %v561_v0 = vld [vmem:[#allocation6] sm:$0xff]   ;;  %v562_v1 = vld [vmem:[#allocation6 + $0x8] sm:$0xff]   ;;  %s676_s2 = smov [#allocation9]  }
  0x38   :  { %505 = vmatprep.subr.bf16.mxu0 %v561_v0  ;;  %537 = vmatprep.subr.bf16.mxu1 %v561_v0  ;;  %v563_v2 = vld [vmem:[#allocation6 + $0x10] sm:$0xff]   ;;  %v564_v3 = vld [vmem:[#allocation6 + $0x18] sm:$0xff]   ;;  %v569_v4 = vld [vmem:[#allocation3] sm:$0xff]   ;;  %s459_s22 = sshll.u32 %s676_s2, 4  ;;  %s460_s22 = int_to_ptr.vmem [resolvable:$true] %s459_s22 }
  0x39   :  { %506 = vmatpush3.bf16.msra.mxu0 %v561_v0  ;;  %545 = vmatpush3.bf16.msra.mxu1 %v561_v0  ;;  %v570_v5 = vld [vmem:[#allocation3 + $0x20] sm:$0xff]   ;;  %v566_v7 = vld [vmem:[#allocation6 + $0x28] sm:$0xff]   ;;  %v567_v8 = vld [vmem:[#allocation6 + $0x30] sm:$0xff]   ;;  %s643_s23 = scalar_lea.vmem %s460_s22, 2048  ;;  %p648_p11 = scmp.lt.s32.totalorder %s460_s22, %s460_s22 }
  0x3a   :  { %507 = vmatprep.subr.bf16.mxu0 %v562_v1  ;;  %538 = vmatprep.subr.bf16.mxu1 %v562_v1  ;;  %v565_v6 = vld [vmem:[#allocation6 + $0x20] sm:$0xff]   ;;  %v568_v9 = vld [vmem:[#allocation6 + $0x38] sm:$0xff]   ;;  %v571_v10 = vld [vmem:[#allocation3 + $0x8] sm:$0xff]   ;;  %p644_p10 = scmp.ne.s32.totalorder %s460_s22, %s643_s23  ;;  %p649_p12 = scmp.lt.s32.totalorder %s643_s23, %s643_s23 }
  0x3b   :  { %521 = vmatprep.mubr.bf16.mxu0 %v569_v4  ;;  %529 = vmatprep.mubr.bf16.mxu1 %v570_v5  ;;  %v572_v11 = vld [vmem:[#allocation3 + $0x28] sm:$0xff]   ;;  %v573_v12 = vld [vmem:[#allocation3 + $0x10] sm:$0xff]   ;;  %v575_v14 = vld [vmem:[#allocation3 + $0x18] sm:$0xff]  }
  0x3c   :  { %v574_v13 = vld [vmem:[#allocation3 + $0x30] sm:$0xff]   ;;  %v576_v15 = vld [vmem:[#allocation3 + $0x38] sm:$0xff]   ;;  %v742_v16 = vld [vmem:[#allocation8] ss:$0 sm:$0xff]  ;;  %p650_p13 = por %p649_p12, %p648_p11 }
  0x3d   :  { %508 = vmatpush3.bf16.msra.mxu0 %v562_v1  ;;  %546 = vmatpush3.bf16.msra.mxu1 %v562_v1 }
  0x3e   :  { %509 = vmatprep.subr.bf16.mxu0 %v563_v2  ;;  %539 = vmatprep.subr.bf16.mxu1 %v563_v2  ;;  %p651_p0 = pnand %p650_p13, %p644_p10 }
  0x41   :  { %510 = vmatpush3.bf16.msra.mxu0 %v563_v2  ;;  %547 = vmatpush3.bf16.msra.mxu1 %v563_v2 }
  0x42   :  { %511 = vmatprep.subr.bf16.mxu0 %v564_v3  ;;  %540 = vmatprep.subr.bf16.mxu1 %v564_v3 }
  0x45   :  { %512 = vmatpush3.bf16.msra.mxu0 %v564_v3  ;;  %548 = vmatpush3.bf16.msra.mxu1 %v564_v3 }
  0x46   :  { %513 = vmatprep.subr.bf16.mxu0 %v565_v6  ;;  %541 = vmatprep.subr.bf16.mxu1 %v565_v6 }
  0x49   :  { %514 = vmatpush3.bf16.msra.mxu0 %v565_v6  ;;  %549 = vmatpush3.bf16.msra.mxu1 %v565_v6 }
  0x4a   :  { %515 = vmatprep.subr.bf16.mxu0 %v566_v7  ;;  %542 = vmatprep.subr.bf16.mxu1 %v566_v7 }
  0x4d   :  { %516 = vmatpush3.bf16.msra.mxu0 %v566_v7  ;;  %550 = vmatpush3.bf16.msra.mxu1 %v566_v7 }
  0x4e   :  { %517 = vmatprep.subr.bf16.mxu0 %v567_v8  ;;  %543 = vmatprep.subr.bf16.mxu1 %v567_v8 }
  0x51   :  { %518 = vmatpush3.bf16.msra.mxu0 %v567_v8  ;;  %551 = vmatpush3.bf16.msra.mxu1 %v567_v8 }
  0x52   :  { %519 = vmatprep.subr.bf16.mxu0 %v568_v9  ;;  %544 = vmatprep.subr.bf16.mxu1 %v568_v9 }
  0x55   :  { %520 = vmatpush3.bf16.msra.mxu0 %v568_v9  ;;  %552 = vmatpush3.bf16.msra.mxu1 %v568_v9 }
  0x58   :  { %522 = vmatmul.mubr.bf16.vlgmr.msra.gmra.mrb[0].mxu0 %v571_v10  ;;  %530 = vmatmul.mubr.bf16.vlgmr.msra.gmra.mrb[0].mxu1 %v572_v11 }
  0x59   :  { %525 = vmatprep.mubr.bf16.mxu0 %v573_v12  ;;  %533 = vmatprep.mubr.bf16.mxu1 %v574_v13 }
  0x60   :  { %526 = vmatmul.mubr.bf16.gmra.mrb[4].mxu0 %v575_v14  ;;  %534 = vmatmul.mubr.bf16.gmra.mrb[4].mxu1 %v576_v15 }
 0x12b   :  { %v523_v17 = vpop.f32.mrb[0].mxu0  ;;  %v531_v18 = vpop.f32.mrb[0].mxu1 }
 0x12c   :  { %v376_v19 = vadd.f32 %v523_v17, %v742_v16  ;;  %v384_v20 = vadd.f32 %v531_v18, %v742_v16  ;;  %v253_v21 = vpop.f32.mrb[1].mxu0  ;;  %v285_v22 = vpop.f32.mrb[1].mxu1 }
 0x12d   :  { %v374_v23 = vadd.f32 %v742_v16, %v253_v21  ;;  %v382_v24 = vadd.f32 %v742_v16, %v285_v22  ;;  %v524_v25 = vpop.f32.mrb[2].mxu0  ;;  %v532_v26 = vpop.f32.mrb[2].mxu1 }
 0x12e   :  { %vm392_vm0 = vcmp.ge.f32.partialorder %v376_v19, 0.0  ;;  %v408_v27 = vmul.f32 0.2, %v376_v19  ;;  %vm400_vm1 = vcmp.ge.f32.partialorder %v384_v20, 0.0  ;;  %v416_v28 = vmul.f32 0.2, %v384_v20 }
 0x12f   :  { %vm390_vm2 = vcmp.ge.f32.partialorder %v374_v23, 0.0  ;;  %v406_v29 = vmul.f32 0.2, %v374_v23  ;;  %vm398_vm3 = vcmp.ge.f32.partialorder %v382_v24, 0.0  ;;  %v414_v30 = vmul.f32 0.2, %v382_v24 }
 0x130   :  { %v424_v31 = vsel %vm392_vm0, %v376_v19, %v408_v27  ;;  %v432_v32 = vsel %vm400_vm1, %v384_v20, %v416_v28  ;;  %v377_v33 = vadd.f32 %v524_v25, %v742_v16  ;;  %v385_v34 = vadd.f32 %v532_v26, %v742_v16  ;;  %v256_v35 = vpop.f32.mrb[3].mxu0  ;;  %v288_v36 = vpop.f32.mrb[3].mxu1 }
 0x131   :  { %440 = vst [vmem:[#allocation9 + $0x10] sm:$0xff] %v424_v31  ;;  %448 = vst [vmem:[#allocation9 + $0x50] sm:$0xff] %v432_v32  ;;  %v422_v37 = vsel %vm390_vm2, %v374_v23, %v406_v29  ;;  %v430_v38 = vsel %vm398_vm3, %v382_v24, %v414_v30  ;;  %v375_v39 = vadd.f32 %v742_v16, %v256_v35 }
 0x132   :  { %v383_v40 = vadd.f32 %v742_v16, %v288_v36  ;;  %438 = vst [vmem:[#allocation9] sm:$0xff] %v422_v37  ;;  %446 = vst [vmem:[#allocation9 + $0x40] sm:$0xff] %v430_v38  ;;  %vm393_vm4 = vcmp.ge.f32.partialorder %v377_v33, 0.0  ;;  %v409_v41 = vmul.f32 0.2, %v377_v33  ;;  %vm401_vm5 = vcmp.ge.f32.partialorder %v385_v34, 0.0 }
 0x133   :  { %v417_v42 = vmul.f32 0.2, %v385_v34  ;;  %vm391_vm6 = vcmp.ge.f32.partialorder %v375_v39, 0.0  ;;  %v407_v43 = vmul.f32 0.2, %v375_v39  ;;  %v527_v47 = vpop.f32.mrb[4].mxu0 }
 0x134   :  { %vm399_vm7 = vcmp.ge.f32.partialorder %v383_v40, 0.0  ;;  %v415_v44 = vmul.f32 0.2, %v383_v40  ;;  %v425_v45 = vsel %vm393_vm4, %v377_v33, %v409_v41  ;;  %v535_v48 = vpop.f32.mrb[4].mxu1  ;;  %v380_v51 = vadd.f32 %v527_v47, %v742_v16  ;;  %v269_v53 = vpop.f32.mrb[5].mxu0 }
 0x135   :  { %v433_v46 = vsel %vm401_vm5, %v385_v34, %v417_v42  ;;  %441 = vst [vmem:[#allocation9 + $0x18] sm:$0xff] %v425_v45  ;;  %v423_v49 = vsel %vm391_vm6, %v375_v39, %v407_v43  ;;  %v388_v52 = vadd.f32 %v535_v48, %v742_v16  ;;  %v301_v54 = vpop.f32.mrb[5].mxu1  ;;  %v378_v55 = vadd.f32 %v742_v16, %v269_v53  ;;  %v528_v57 = vpop.f32.mrb[6].mxu0 }
 0x136   :  { %449 = vst [vmem:[#allocation9 + $0x58] sm:$0xff] %v433_v46  ;;  %v431_v50 = vsel %vm399_vm7, %v383_v40, %v415_v44  ;;  %439 = vst [vmem:[#allocation9 + $0x8] sm:$0xff] %v423_v49  ;;  %v386_v56 = vadd.f32 %v742_v16, %v301_v54  ;;  %v536_v58 = vpop.f32.mrb[6].mxu1  ;;  %vm396_vm8 = vcmp.ge.f32.partialorder %v380_v51, 0.0  ;;  %v412_v59 = vmul.f32 0.2, %v380_v51 }
 0x137   :  { %447 = vst [vmem:[#allocation9 + $0x48] sm:$0xff] %v431_v50  ;;  %vm404_vm9 = vcmp.ge.f32.partialorder %v388_v52, 0.0  ;;  %v420_v60 = vmul.f32 0.2, %v388_v52  ;;  %vm394_vm10 = vcmp.ge.f32.partialorder %v378_v55, 0.0  ;;  %v381_v1 = vadd.f32 %v528_v57, %v742_v16  ;;  %v272_v3 = vpop.f32.mrb[7].mxu0 }
 0x138   :  { %v410_v61 = vmul.f32 0.2, %v378_v55  ;;  %vm402_vm11 = vcmp.ge.f32.partialorder %v386_v56, 0.0  ;;  %v418_v62 = vmul.f32 0.2, %v386_v56  ;;  %v428_v63 = vsel %vm396_vm8, %v380_v51, %v412_v59  ;;  %v304_v4 = vpop.f32.mrb[7].mxu1 }
 0x139   :  { %v436_v0 = vsel %vm404_vm9, %v388_v52, %v420_v60  ;;  %v389_v2 = vadd.f32 %v536_v58, %v742_v16  ;;  %444 = vst [vmem:[#allocation9 + $0x30] sm:$0xff] %v428_v63  ;;  %v379_v7 = vadd.f32 %v742_v16, %v272_v3  ;;  %v387_v8 = vadd.f32 %v742_v16, %v304_v4 }
 0x13a   :  { %452 = vst [vmem:[#allocation9 + $0x70] sm:$0xff] %v436_v0  ;;  %v426_v5 = vsel %vm394_vm10, %v378_v55, %v410_v61  ;;  %v434_v6 = vsel %vm402_vm11, %v386_v56, %v418_v62  ;;  %vm397_vm12 = vcmp.ge.f32.partialorder %v381_v1, 0.0  ;;  %v413_v9 = vmul.f32 0.2, %v381_v1 }
 0x13b   :  { %442 = vst [vmem:[#allocation9 + $0x20] sm:$0xff] %v426_v5  ;;  %450 = vst [vmem:[#allocation9 + $0x60] sm:$0xff] %v434_v6  ;;  %vm405_vm13 = vcmp.ge.f32.partialorder %v389_v2, 0.0  ;;  %v421_v10 = vmul.f32 0.2, %v389_v2  ;;  %vm395_vm14 = vcmp.ge.f32.partialorder %v379_v7, 0.0 }
 0x13c   :  { %v411_v11 = vmul.f32 0.2, %v379_v7  ;;  %vm403_vm15 = vcmp.ge.f32.partialorder %v387_v8, 0.0  ;;  %v419_v12 = vmul.f32 0.2, %v387_v8  ;;  %v429_v13 = vsel %vm397_vm12, %v381_v1, %v413_v9 }
 0x13d   :  { %v437_v14 = vsel %vm405_vm13, %v389_v2, %v421_v10  ;;  %445 = vst [vmem:[#allocation9 + $0x38] sm:$0xff] %v429_v13 }
 0x13e   :  { %453 = vst [vmem:[#allocation9 + $0x78] sm:$0xff] %v437_v14  ;;  %v427_v15 = vsel %vm395_vm14, %v379_v7, %v411_v11  ;;  %v435_v17 = vsel %vm403_vm15, %v387_v8, %v419_v12 }
 0x13f   :  { %443 = vst [vmem:[#allocation9 + $0x28] sm:$0xff] %v427_v15  ;;  %451 = vst [vmem:[#allocation9 + $0x68] sm:$0xff] %v435_v17 }
 0x140   :  { %654 = shalt.err (!%p651_p0)
}
 0x141   :  { %s655_s26 = scalar_lea.hbm %s775_s3, 2048 }
 0x142   :  { %p656_p1 = scmp.ne.s32.totalorder %s775_s3, %s655_s26  ;;  %p659_p2 = scmp.lt.u32.totalorder %s655_s26, %s775_s3 }
 0x144   :  { %p661_p3 = pnand %p659_p2, %p656_p1 }
 0x146   :  { %664 = shalt.err (!%p661_p3)
}
 0x147   :  { %s677_s4 = smov 128   ;;  %s678_s5 = smov 8  }
 0x148   :  { %465 = dma.vmem_to_hbm [thread:$0]  %s460_s22, 2048, %s775_s3, [#allocation5], %s677_s4, %s677_s4, %s678_s5  }
 0x149   :  { %669 = dma.done.wait [#allocation5], 2048  }
 0x14a   :  { %670 = vsyncadd [#allocation5], 4294965248 }
 0x14b   :  { %469 = vsyncpa [#allocation4], 1 }
 0x14c   :  { %470 = vsyncpa [#allocation7], 1 }
 0x14d   :  { %471 = vsyncpa [#allocation5], 1 }

// kernel: critic_forward.6
= control target key start
LH: loop header
LB: loop body
LE: loop exit
PB: predicated region body
PF: predicated region fallthrough
CT: control target
= control target key end

     0   :  { %8 = vsyncpa [#allocation4], 0  ;;  %s599_s0 = inlined_call_operand.hbm [shape: bf16[32,256], index: 0, kind: input, shape index: {}]   ;;  %s600_s1 = inlined_call_operand.hbm [shape: bf16[256,128], index: 1, kind: input, shape index: {}]   ;;  %s601_s2 = inlined_call_operand.hbm [shape: f32[1,128], index: 2, kind: input, shape index: {}]   ;;  %s602_s3 = inlined_call_operand.hbm [shape: f32[32,128], index: 3, kind: output, shape index: {}]  }
   0x1   :  { %9 = vsyncpa [#allocation7], 0 }
   0x2   :  { %10 = vsyncpa [#allocation5], 0  ;;  %s517_s12 = smov [#allocation6]   ;;  %s423_s16 = scalar_lea.hbm %s600_s1, 2048 }
   0x3   :  { %s28_s13 = sshll.u32 %s517_s12, 4  ;;  %p424_p0 = scmp.ne.s32.totalorder %s600_s1, %s423_s16  ;;  %s29_s13 = int_to_ptr.vmem [resolvable:$true] %s28_s13 }
   0x4   :  { %p427_p1 = scmp.lt.u32.totalorder %s423_s16, %s600_s1 }
   0x6   :  { %p429_p2 = pnand %p427_p1, %p424_p0 }
   0x8   :  { %432 = shalt.err (!%p429_p2)
}
   0x9   :  { %s433_s21 = scalar_lea.vmem %s29_s13, 2048  ;;  %p438_p4 = scmp.lt.s32.totalorder %s29_s13, %s29_s13 }
   0xa   :  { %p434_p3 = scmp.ne.s32.totalorder %s29_s13, %s433_s21  ;;  %p439_p5 = scmp.lt.s32.totalorder %s433_s21, %s433_s21 }
   0xc   :  { %p440_p6 = por %p439_p5, %p438_p4 }
   0xe   :  { %p441_p7 = pnand %p440_p6, %p434_p3 }
  0x10   :  { %444 = shalt.err (!%p441_p7)
}
  0x11   :  { %s518_s22 = smov 64   ;;  %s519_s23 = smov 4  }
  0x12   :  { %34 = dma.hbm_to_vmem [thread:$0]  %s600_s1, 2048, %s29_s13, [#allocation7], %s518_s22, %s518_s22, %s519_s23  }
  0x13   :  { %s520_s26 = smov [#allocation3]   ;;  %s445_s30 = scalar_lea.hbm %s599_s0, 512 }
  0x14   :  { %s16_s27 = sshll.u32 %s520_s26, 4  ;;  %p446_p8 = scmp.ne.s32.totalorder %s599_s0, %s445_s30  ;;  %s17_s27 = int_to_ptr.vmem [resolvable:$true] %s16_s27 }
  0x15   :  { %p449_p9 = scmp.lt.u32.totalorder %s445_s30, %s599_s0 }
  0x17   :  { %p451_p10 = pnand %p449_p9, %p446_p8 }
  0x19   :  { %454 = shalt.err (!%p451_p10)
}
  0x1a   :  { %s455_s8 = scalar_lea.vmem %s17_s27, 512  ;;  %p460_p12 = scmp.lt.s32.totalorder %s17_s27, %s17_s27 }
  0x1b   :  { %p456_p11 = scmp.ne.s32.totalorder %s17_s27, %s455_s8  ;;  %p461_p13 = scmp.lt.s32.totalorder %s455_s8, %s455_s8 }
  0x1d   :  { %p462_p0 = por %p461_p13, %p460_p12 }
  0x1f   :  { %p463_p1 = pnand %p462_p0, %p456_p11 }
  0x21   :  { %466 = shalt.err (!%p463_p1)
}
  0x22   :  { %s521_s1 = smov 128   ;;  %s522_s9 = smov 8  }
  0x23   :  { %22 = dma.hbm_to_vmem [thread:$0]  %s599_s0, 512, %s17_s27, [#allocation4], %s521_s1, %s521_s1, %s522_s9  }
  0x24   :  { %s523_s12 = smov [#allocation8]   ;;  %s467_s16 = scalar_lea.hbm %s601_s2, 16 }
  0x25   :  { %s41_s13 = sshll.u32 %s523_s12, 4  ;;  %p468_p2 = scmp.ne.s32.totalorder %s601_s2, %s467_s16  ;;  %s42_s13 = int_to_ptr.vmem [resolvable:$true] %s41_s13 }
  0x26   :  { %p471_p3 = scmp.lt.u32.totalorder %s467_s16, %s601_s2 }
  0x28   :  { %p473_p4 = pnand %p471_p3, %p468_p2 }
  0x2a   :  { %476 = shalt.err (!%p473_p4)
}
  0x2b   :  { %s477_s21 = scalar_lea.vmem %s42_s13, 16  ;;  %s481_s0 = scalar_lea.vmem %s42_s13, 32 }
  0x2c   :  { %p478_p5 = scmp.ne.s32.totalorder %s42_s13, %s477_s21  ;;  %p482_p6 = scmp.lt.s32.totalorder %s42_s13, %s42_s13 }
  0x2d   :  { %p483_p7 = scmp.lt.s32.totalorder %s481_s0, %s477_s21 }
  0x2f   :  { %p484_p8 = por %p483_p7, %p482_p6 }
  0x31   :  { %p485_p9 = pnand %p484_p8, %p478_p5 }
  0x33   :  { %488 = shalt.err (!%p485_p9)
}
  0x34   :  { %44 = dma.hbm_to_vmem [thread:$0]  %s601_s2, 16, %s42_s13, [#allocation7]  }
  0x35   :  { %511 = dma.done.wait [#allocation4], 512  }
  0x36   :  { %512 = vsyncadd [#allocation4], 4294966784 }
  0x37   :  { %513 = dma.done.wait [#allocation7], 2064  }
  0x38   :  { %514 = vsyncadd [#allocation7], 4294965232  ;;  %v401_v0 = vld [vmem:[#allocation6 + $0x40] sm:$0xff]   ;;  %v403_v2 = vld [vmem:[#allocation6 + $0x48] sm:$0xff]   ;;  %s524_s2 = smov [#allocation9]  }
  0x39   :  { %v402_v1 = vld [vmem:[#allocation6] sm:$0xff]   ;;  %349 = vmatprep.subr.bf16.mxu0 %v401_v0  ;;  %377 = vmatprep.subr.bf16.mxu1 %v401_v0  ;;  %v404_v3 = vld [vmem:[#allocation6 + $0x8] sm:$0xff]   ;;  %v405_v4 = vld [vmem:[#allocation6 + $0x50] sm:$0xff]   ;;  %s315_s24 = sshll.u32 %s524_s2, 4  ;;  %s316_s24 = int_to_ptr.vmem [resolvable:$true] %s315_s24 }
  0x3a   :  { %350 = vmatpush3.bf16.msra.mxu0 %v402_v1  ;;  %385 = vmatpush3.bf16.msra.mxu1 %v402_v1  ;;  %v406_v5 = vld [vmem:[#allocation6 + $0x10] sm:$0xff]   ;;  %v407_v6 = vld [vmem:[#allocation6 + $0x58] sm:$0xff]   ;;  %v409_v8 = vld [vmem:[#allocation6 + $0x60] sm:$0xff]   ;;  %s489_s25 = scalar_lea.vmem %s316_s24, 512  ;;  %p494_p11 = scmp.lt.s32.totalorder %s316_s24, %s316_s24 }
  0x3b   :  { %351 = vmatprep.subr.bf16.mxu0 %v403_v2  ;;  %378 = vmatprep.subr.bf16.mxu1 %v403_v2  ;;  %v408_v7 = vld [vmem:[#allocation6 + $0x18] sm:$0xff]   ;;  %v410_v9 = vld [vmem:[#allocation6 + $0x20] sm:$0xff]   ;;  %v411_v10 = vld [vmem:[#allocation6 + $0x68] sm:$0xff]   ;;  %p490_p10 = scmp.ne.s32.totalorder %s316_s24, %s489_s25  ;;  %p495_p12 = scmp.lt.s32.totalorder %s489_s25, %s489_s25 }
  0x3c   :  { %v419_v11 = vld [vmem:[#allocation3 + $0x4] ss:$8 sps:$4 sm:$0xff]   ;;  %v422_v12 = vld [vmem:[#allocation3 + $0x14] ss:$8 sps:$4 sm:$0xff]   ;;  %v417_v18 = vld [vmem:[#allocation3] ss:$8 sps:$4 sm:$0xff]  }
  0x3d   :  { %v412_v13 = vld [vmem:[#allocation6 + $0x28] sm:$0xff]   ;;  %v413_v14 = vld [vmem:[#allocation6 + $0x70] sm:$0xff]   ;;  %251 = vmatprep.mubr.bf16.mxu0 %v419_v11  ;;  %259 = vmatprep.mubr.bf16.mxu1 %v422_v12  ;;  %v415_v16 = vld [vmem:[#allocation6 + $0x78] sm:$0xff]   ;;  %p496_p13 = por %p495_p12, %p494_p11 }
  0x3e   :  { %352 = vmatpush3.bf16.msra.mxu0 %v404_v3  ;;  %386 = vmatpush3.bf16.msra.mxu1 %v404_v3  ;;  %v414_v15 = vld [vmem:[#allocation6 + $0x30] sm:$0xff]   ;;  %v416_v17 = vld [vmem:[#allocation6 + $0x38] sm:$0xff]   ;;  %v348_v23 = vld [vmem:[#allocation8] ss:$0 sm:$0xff] }
  0x3f   :  { %353 = vmatprep.subr.bf16.mxu0 %v405_v4  ;;  %379 = vmatprep.subr.bf16.mxu1 %v405_v4  ;;  %v420_v19 = vld [vmem:[#allocation3 + $0x10] ss:$8 sps:$4 sm:$0xff]   ;;  %p497_p0 = pnand %p496_p13, %p490_p10 }
  0x42   :  { %354 = vmatpush3.bf16.msra.mxu0 %v406_v5  ;;  %387 = vmatpush3.bf16.msra.mxu1 %v406_v5 }
  0x43   :  { %355 = vmatprep.subr.bf16.mxu0 %v407_v6  ;;  %380 = vmatprep.subr.bf16.mxu1 %v407_v6 }
  0x46   :  { %356 = vmatpush3.bf16.msra.mxu0 %v408_v7  ;;  %388 = vmatpush3.bf16.msra.mxu1 %v408_v7 }
  0x47   :  { %357 = vmatprep.subr.bf16.mxu0 %v409_v8  ;;  %381 = vmatprep.subr.bf16.mxu1 %v409_v8 }
  0x4a   :  { %358 = vmatpush3.bf16.msra.mxu0 %v410_v9  ;;  %389 = vmatpush3.bf16.msra.mxu1 %v410_v9 }
  0x4b   :  { %359 = vmatprep.subr.bf16.mxu0 %v411_v10  ;;  %382 = vmatprep.subr.bf16.mxu1 %v411_v10 }
  0x4e   :  { %360 = vmatpush3.bf16.msra.mxu0 %v412_v13  ;;  %390 = vmatpush3.bf16.msra.mxu1 %v412_v13 }
  0x4f   :  { %361 = vmatprep.subr.bf16.mxu0 %v413_v14  ;;  %383 = vmatprep.subr.bf16.mxu1 %v413_v14 }
  0x52   :  { %362 = vmatpush3.bf16.msra.mxu0 %v414_v15  ;;  %391 = vmatpush3.bf16.msra.mxu1 %v414_v15 }
  0x53   :  { %363 = vmatprep.subr.bf16.mxu0 %v415_v16  ;;  %384 = vmatprep.subr.bf16.mxu1 %v415_v16 }
  0x56   :  { %364 = vmatpush3.bf16.msra.mxu0 %v416_v17  ;;  %392 = vmatpush3.bf16.msra.mxu1 %v416_v17 }
  0x59   :  { %252 = vmatmul.mubr.bf16.vlgmr.msra.gmra.mrb[0].mxu0 %v417_v18  ;;  %260 = vmatmul.mubr.bf16.vlgmr.msra.gmra.mrb[0].mxu1 %v420_v19 }
 0x12c   :  { %v365_v20 = vpop.f32.mrb[0].mxu0  ;;  %v371_v21 = vpop.f32.mrb[0].mxu1 }
 0x12d   :  { %v366_v22 = vpop.f32.mrb[1].mxu0  ;;  %v372_v24 = vpop.f32.mrb[1].mxu1 }
 0x12e   :  { %v367_v25 = vadd.f32 %v366_v22, %v365_v20  ;;  %v373_v26 = vadd.f32 %v372_v24, %v371_v21  ;;  %v368_v27 = vpop.f32.mrb[2].mxu0  ;;  %v374_v28 = vpop.f32.mrb[2].mxu1 }
 0x12f   :  { %v369_v29 = vpop.f32.mrb[3].mxu0  ;;  %v375_v30 = vpop.f32.mrb[3].mxu1 }
 0x130   :  { %v290_v31 = vadd.f32 %v367_v25, %v348_v23  ;;  %v292_v32 = vadd.f32 %v373_v26, %v348_v23  ;;  %v370_v33 = vadd.f32 %v369_v29, %v368_v27  ;;  %v376_v34 = vadd.f32 %v375_v30, %v374_v28 }
 0x132   :  { %vm294_vm0 = vcmp.ge.f32.partialorder %v290_v31, 0.0  ;;  %v298_v35 = vmul.f32 0.2, %v290_v31  ;;  %vm296_vm1 = vcmp.ge.f32.partialorder %v292_v32, 0.0  ;;  %v300_v36 = vmul.f32 0.2, %v292_v32 }
 0x133   :  { %v291_v37 = vadd.f32 %v370_v33, %v348_v23  ;;  %v293_v38 = vadd.f32 %v376_v34, %v348_v23 }
 0x134   :  { %v302_v39 = vsel %vm294_vm0, %v290_v31, %v298_v35  ;;  %v304_v40 = vsel %vm296_vm1, %v292_v32, %v300_v36 }
 0x135   :  { %306 = vst [vmem:[#allocation9] sm:$0xff] %v302_v39  ;;  %308 = vst [vmem:[#allocation9 + $0x10] sm:$0xff] %v304_v40  ;;  %vm295_vm2 = vcmp.ge.f32.partialorder %v291_v37, 0.0  ;;  %v299_v41 = vmul.f32 0.2, %v291_v37  ;;  %vm297_vm3 = vcmp.ge.f32.partialorder %v293_v38, 0.0 }
 0x136   :  { %v301_v42 = vmul.f32 0.2, %v293_v38 }
 0x137   :  { %v303_v43 = vsel %vm295_vm2, %v291_v37, %v299_v41 }
 0x138   :  { %v305_v44 = vsel %vm297_vm3, %v293_v38, %v301_v42  ;;  %307 = vst [vmem:[#allocation9 + $0x8] sm:$0xff] %v303_v43 }
 0x139   :  { %309 = vst [vmem:[#allocation9 + $0x18] sm:$0xff] %v305_v44 }
 0x13a   :  { %500 = shalt.err (!%p497_p0)
}
 0x13b   :  { %s501_s28 = scalar_lea.hbm %s602_s3, 512 }
 0x13c   :  { %p502_p1 = scmp.ne.s32.totalorder %s602_s3, %s501_s28  ;;  %p505_p2 = scmp.lt.u32.totalorder %s501_s28, %s602_s3 }
 0x13e   :  { %p507_p3 = pnand %p505_p2, %p502_p1 }
 0x140   :  { %510 = shalt.err (!%p507_p3)
}
 0x141   :  { %321 = dma.vmem_to_hbm [thread:$0]  %s316_s24, 512, %s602_s3, [#allocation5], %s521_s1, %s521_s1, %s522_s9  }
 0x142   :  { %515 = dma.done.wait [#allocation5], 512  }
 0x143   :  { %516 = vsyncadd [#allocation5], 4294966784 }
 0x144   :  { %325 = vsyncpa [#allocation4], 1 }
 0x145   :  { %326 = vsyncpa [#allocation7], 1 }
 0x146   :  { %327 = vsyncpa [#allocation5], 1 }

// kernel: critic_forward.7
= control target key start
LH: loop header
LB: loop body
LE: loop exit
PB: predicated region body
PF: predicated region fallthrough
CT: control target
= control target key end

     0   :  { %8 = vsyncpa [#allocation4], 0  ;;  %s764_s0 = inlined_call_operand.hbm [shape: bf16[16,512], index: 0, kind: input, shape index: {}]   ;;  %s765_s1 = inlined_call_operand.hbm [shape: bf16[512,128], index: 1, kind: input, shape index: {}]   ;;  %s766_s2 = inlined_call_operand.hbm [shape: f32[1,128], index: 2, kind: input, shape index: {}]   ;;  %s767_s3 = inlined_call_operand.hbm [shape: f32[16,128], index: 3, kind: output, shape index: {}]  }
   0x1   :  { %9 = vsyncpa [#allocation7], 0 }
   0x2   :  { %10 = vsyncpa [#allocation5], 0  ;;  %s686_s12 = smov [#allocation6]   ;;  %s592_s16 = scalar_lea.hbm %s765_s1, 4096 }
   0x3   :  { %s28_s13 = sshll.u32 %s686_s12, 4  ;;  %p593_p0 = scmp.ne.s32.totalorder %s765_s1, %s592_s16  ;;  %s29_s13 = int_to_ptr.vmem [resolvable:$true] %s28_s13 }
   0x4   :  { %p596_p1 = scmp.lt.u32.totalorder %s592_s16, %s765_s1 }
   0x6   :  { %p598_p2 = pnand %p596_p1, %p593_p0 }
   0x8   :  { %601 = shalt.err (!%p598_p2)
}
   0x9   :  { %s602_s21 = scalar_lea.vmem %s29_s13, 4096  ;;  %p607_p4 = scmp.lt.s32.totalorder %s29_s13, %s29_s13 }
   0xa   :  { %p603_p3 = scmp.ne.s32.totalorder %s29_s13, %s602_s21  ;;  %p608_p5 = scmp.lt.s32.totalorder %s602_s21, %s602_s21 }
   0xc   :  { %p609_p6 = por %p608_p5, %p607_p4 }
   0xe   :  { %p610_p7 = pnand %p609_p6, %p603_p3 }
  0x10   :  { %613 = shalt.err (!%p610_p7)
}
  0x11   :  { %s687_s22 = smov 64   ;;  %s688_s23 = smov 4  }
  0x12   :  { %34 = dma.hbm_to_vmem [thread:$0]  %s765_s1, 4096, %s29_s13, [#allocation7], %s687_s22, %s687_s22, %s688_s23  }
  0x13   :  { %s689_s26 = smov [#allocation3]   ;;  %s614_s30 = scalar_lea.hbm %s764_s0, 512 }
  0x14   :  { %s16_s27 = sshll.u32 %s689_s26, 4  ;;  %p615_p8 = scmp.ne.s32.totalorder %s764_s0, %s614_s30  ;;  %s17_s27 = int_to_ptr.vmem [resolvable:$true] %s16_s27 }
  0x15   :  { %p618_p9 = scmp.lt.u32.totalorder %s614_s30, %s764_s0 }
  0x17   :  { %p620_p10 = pnand %p618_p9, %p615_p8 }
  0x19   :  { %623 = shalt.err (!%p620_p10)
}
  0x1a   :  { %s624_s8 = scalar_lea.vmem %s17_s27, 512  ;;  %p629_p12 = scmp.lt.s32.totalorder %s17_s27, %s17_s27 }
  0x1b   :  { %p625_p11 = scmp.ne.s32.totalorder %s17_s27, %s624_s8  ;;  %p630_p13 = scmp.lt.s32.totalorder %s624_s8, %s624_s8 }
  0x1d   :  { %p631_p0 = por %p630_p13, %p629_p12 }
  0x1f   :  { %p632_p1 = pnand %p631_p0, %p625_p11 }
  0x21   :  { %635 = shalt.err (!%p632_p1)
}
  0x22   :  { %s690_s1 = smov 256   ;;  %s691_s9 = smov 16  }
  0x23   :  { %22 = dma.hbm_to_vmem [thread:$0]  %s764_s0, 512, %s17_s27, [#allocation4], %s690_s1, %s690_s1, %s691_s9  }
  0x24   :  { %s692_s12 = smov [#allocation8]   ;;  %s636_s16 = scalar_lea.hbm %s766_s2, 16 }
  0x25   :  { %s41_s13 = sshll.u32 %s692_s12, 4  ;;  %p637_p2 = scmp.ne.s32.totalorder %s766_s2, %s636_s16  ;;  %s42_s13 = int_to_ptr.vmem [resolvable:$true] %s41_s13 }
  0x26   :  { %p640_p3 = scmp.lt.u32.totalorder %s636_s16, %s766_s2 }
  0x28   :  { %p642_p4 = pnand %p640_p3, %p637_p2 }
  0x2a   :  { %645 = shalt.err (!%p642_p4)
}
  0x2b   :  { %s646_s21 = scalar_lea.vmem %s42_s13, 16  ;;  %s650_s0 = scalar_lea.vmem %s42_s13, 32 }
  0x2c   :  { %p647_p5 = scmp.ne.s32.totalorder %s42_s13, %s646_s21  ;;  %p651_p6 = scmp.lt.s32.totalorder %s42_s13, %s42_s13 }
  0x2d   :  { %p652_p7 = scmp.lt.s32.totalorder %s650_s0, %s646_s21 }
  0x2f   :  { %p653_p8 = por %p652_p7, %p651_p6 }
  0x31   :  { %p654_p9 = pnand %p653_p8, %p647_p5 }
  0x33   :  { %657 = shalt.err (!%p654_p9)
}
  0x34   :  { %44 = dma.hbm_to_vmem [thread:$0]  %s766_s2, 16, %s42_s13, [#allocation7]  }
  0x35   :  { %680 = dma.done.wait [#allocation4], 512  }
  0x36   :  { %681 = vsyncadd [#allocation4], 4294966784 }
  0x37   :  { %682 = dma.done.wait [#allocation7], 4112  }
  0x38   :  { %683 = vsyncadd [#allocation7], 4294963184  ;;  %v554_v0 = vld [vmem:[#allocation6 + $0x40] sm:$0xff]   ;;  %v558_v4 = vld [vmem:[#allocation6 + $0x48] sm:$0xff]   ;;  %s693_s2 = smov [#allocation9]  }
  0x39   :  { %v555_v1 = vld [vmem:[#allocation6 + $0xc0] sm:$0xff]   ;;  %500 = vmatprep.subr.bf16.mxu0 %v554_v0  ;;  %v559_v5 = vld [vmem:[#allocation6 + $0xc8] sm:$0xff]   ;;  %v562_v8 = vld [vmem:[#allocation6 + $0x50] sm:$0xff]   ;;  %s450_s24 = sshll.u32 %s693_s2, 4  ;;  %s451_s24 = int_to_ptr.vmem [resolvable:$true] %s450_s24 }
  0x3a   :  { %v556_v2 = vld [vmem:[#allocation6] sm:$0xff]   ;;  %522 = vmatprep.subr.bf16.mxu1 %v555_v1  ;;  %v560_v6 = vld [vmem:[#allocation6 + $0x8] sm:$0xff]   ;;  %v563_v9 = vld [vmem:[#allocation6 + $0xd0] sm:$0xff]   ;;  %s658_s25 = scalar_lea.vmem %s451_s24, 256  ;;  %p663_p11 = scmp.lt.s32.totalorder %s451_s24, %s451_s24 }
  0x3b   :  { %v557_v3 = vld [vmem:[#allocation6 + $0x80] sm:$0xff]   ;;  %501 = vmatpush3.bf16.msra.mxu0 %v556_v2  ;;  %v561_v7 = vld [vmem:[#allocation6 + $0x88] sm:$0xff]   ;;  %v564_v10 = vld [vmem:[#allocation6 + $0x10] sm:$0xff]   ;;  %p659_p10 = scmp.ne.s32.totalorder %s451_s24, %s658_s25  ;;  %p664_p12 = scmp.lt.s32.totalorder %s658_s25, %s658_s25 }
  0x3c   :  { %523 = vmatpush3.bf16.msra.mxu1 %v557_v3  ;;  %502 = vmatprep.subr.bf16.mxu0 %v558_v4  ;;  %v565_v11 = vld [vmem:[#allocation6 + $0x90] sm:$0xff]   ;;  %v566_v12 = vld [vmem:[#allocation6 + $0x58] sm:$0xff]   ;;  %v570_v16 = vld [vmem:[#allocation6 + $0x60] sm:$0xff]  }
  0x3d   :  { %524 = vmatprep.subr.bf16.mxu1 %v559_v5  ;;  %v567_v13 = vld [vmem:[#allocation6 + $0xd8] sm:$0xff]   ;;  %v571_v17 = vld [vmem:[#allocation6 + $0xe0] sm:$0xff]   ;;  %v574_v20 = vld [vmem:[#allocation6 + $0x68] sm:$0xff]   ;;  %p665_p13 = por %p664_p12, %p663_p11 }
  0x3e   :  { %v568_v14 = vld [vmem:[#allocation6 + $0x18] sm:$0xff]   ;;  %v572_v18 = vld [vmem:[#allocation6 + $0x20] sm:$0xff]   ;;  %v575_v21 = vld [vmem:[#allocation6 + $0xe8] sm:$0xff]  }
  0x3f   :  { %503 = vmatpush3.bf16.msra.mxu0 %v560_v6  ;;  %v569_v15 = vld [vmem:[#allocation6 + $0x98] sm:$0xff]   ;;  %v573_v19 = vld [vmem:[#allocation6 + $0xa0] sm:$0xff]   ;;  %v576_v22 = vld [vmem:[#allocation6 + $0x28] sm:$0xff]   ;;  %p666_p0 = pnand %p665_p13, %p659_p10 }
  0x40   :  { %525 = vmatpush3.bf16.msra.mxu1 %v561_v7  ;;  %504 = vmatprep.subr.bf16.mxu0 %v562_v8  ;;  %v577_v23 = vld [vmem:[#allocation6 + $0xa8] sm:$0xff]   ;;  %v578_v24 = vld [vmem:[#allocation6 + $0x70] sm:$0xff]   ;;  %v582_v28 = vld [vmem:[#allocation6 + $0x78] sm:$0xff]  }
  0x41   :  { %526 = vmatprep.subr.bf16.mxu1 %v563_v9  ;;  %v579_v25 = vld [vmem:[#allocation6 + $0xf0] sm:$0xff]   ;;  %v583_v29 = vld [vmem:[#allocation6 + $0xf8] sm:$0xff]   ;;  %v499_v45 = vld [vmem:[#allocation8] ss:$0 sm:$0xff] }
  0x42   :  { %v580_v26 = vld [vmem:[#allocation6 + $0x30] sm:$0xff]   ;;  %v584_v30 = vld [vmem:[#allocation6 + $0x38] sm:$0xff]  }
  0x43   :  { %505 = vmatpush3.bf16.msra.mxu0 %v564_v10  ;;  %v581_v27 = vld [vmem:[#allocation6 + $0xb0] sm:$0xff]   ;;  %v585_v31 = vld [vmem:[#allocation6 + $0xb8] sm:$0xff]  }
  0x44   :  { %527 = vmatpush3.bf16.msra.mxu1 %v565_v11  ;;  %506 = vmatprep.subr.bf16.mxu0 %v566_v12  ;;  %v586_v32 = vld [vmem:[#allocation3] ss:$16 sps:$4 sm:$0xff]   ;;  %v588_v33 = vld [vmem:[#allocation3 + $0x4] ss:$16 sps:$4 sm:$0xff]   ;;  %v589_v34 = vld [vmem:[#allocation3 + $0x8] ss:$16 sps:$4 sm:$0xff]  }
  0x45   :  { %528 = vmatprep.subr.bf16.mxu1 %v567_v13  ;;  %v591_v35 = vld [vmem:[#allocation3 + $0xc] ss:$16 sps:$4 sm:$0xff]   ;;  %375 = vmatprep.mubr.bf16.mxu0 %v588_v33 }
  0x46   :  { %416 = vmatprep.mubr.bf16.mxu1 %v591_v35 }
  0x47   :  { %507 = vmatpush3.bf16.msra.mxu0 %v568_v14 }
  0x48   :  { %529 = vmatpush3.bf16.msra.mxu1 %v569_v15  ;;  %508 = vmatprep.subr.bf16.mxu0 %v570_v16 }
  0x49   :  { %530 = vmatprep.subr.bf16.mxu1 %v571_v17 }
  0x4b   :  { %509 = vmatpush3.bf16.msra.mxu0 %v572_v18 }
  0x4c   :  { %531 = vmatpush3.bf16.msra.mxu1 %v573_v19  ;;  %510 = vmatprep.subr.bf16.mxu0 %v574_v20 }
  0x4d   :  { %532 = vmatprep.subr.bf16.mxu1 %v575_v21 }
  0x4f   :  { %511 = vmatpush3.bf16.msra.mxu0 %v576_v22 }
  0x50   :  { %533 = vmatpush3.bf16.msra.mxu1 %v577_v23  ;;  %512 = vmatprep.subr.bf16.mxu0 %v578_v24 }
  0x51   :  { %534 = vmatprep.subr.bf16.mxu1 %v579_v25 }
  0x53   :  { %513 = vmatpush3.bf16.msra.mxu0 %v580_v26 }
  0x54   :  { %535 = vmatpush3.bf16.msra.mxu1 %v581_v27  ;;  %514 = vmatprep.subr.bf16.mxu0 %v582_v28 }
  0x55   :  { %536 = vmatprep.subr.bf16.mxu1 %v583_v29 }
  0x57   :  { %515 = vmatpush3.bf16.msra.mxu0 %v584_v30 }
  0x58   :  { %537 = vmatpush3.bf16.msra.mxu1 %v585_v31 }
  0x5a   :  { %376 = vmatmul.mubr.bf16.vlgmr.msra.gmra.mrb[0].mxu0 %v586_v32 }
  0x5b   :  { %417 = vmatmul.mubr.bf16.vlgmr.msra.gmra.mrb[0].mxu1 %v589_v34 }
 0x12d   :  { %v516_v36 = vpop.f32.mrb[0].mxu0 }
 0x12e   :  { %v538_v37 = vpop.f32.mrb[0].mxu1  ;;  %v517_v38 = vpop.f32.mrb[1].mxu0 }
 0x12f   :  { %v518_v39 = vadd.f32 %v517_v38, %v516_v36  ;;  %v539_v40 = vpop.f32.mrb[1].mxu1  ;;  %v519_v41 = vpop.f32.mrb[2].mxu0 }
 0x130   :  { %v540_v42 = vadd.f32 %v539_v40, %v538_v37  ;;  %v541_v43 = vpop.f32.mrb[2].mxu1  ;;  %v520_v44 = vpop.f32.mrb[3].mxu0 }
 0x131   :  { %v521_v46 = vadd.f32 %v520_v44, %v519_v41  ;;  %v542_v47 = vpop.f32.mrb[3].mxu1 }
 0x132   :  { %v419_v48 = vadd.f32 %v540_v42, %v518_v39  ;;  %v543_v49 = vadd.f32 %v542_v47, %v541_v43 }
 0x134   :  { %v441_v50 = vadd.f32 %v499_v45, %v419_v48  ;;  %v422_v51 = vadd.f32 %v543_v49, %v521_v46 }
 0x136   :  { %443 = vst [vmem:[#allocation9] sm:$0xff] %v441_v50  ;;  %v442_v52 = vadd.f32 %v499_v45, %v422_v51 }
 0x138   :  { %444 = vst [vmem:[#allocation9 + $0x8] sm:$0xff] %v442_v52 }
 0x139   :  { %669 = shalt.err (!%p666_p0)
}
 0x13a   :  { %s670_s28 = scalar_lea.hbm %s767_s3, 256 }
 0x13b   :  { %p671_p1 = scmp.ne.s32.totalorder %s767_s3, %s670_s28  ;;  %p674_p2 = scmp.lt.u32.totalorder %s670_s28, %s767_s3 }
 0x13d   :  { %p676_p3 = pnand %p674_p2, %p671_p1 }
 0x13f   :  { %679 = shalt.err (!%p676_p3)
}
 0x140   :  { %s694_s6 = smov 128   ;;  %s695_s7 = smov 8  }
 0x141   :  { %456 = dma.vmem_to_hbm [thread:$0]  %s451_s24, 256, %s767_s3, [#allocation5], %s694_s6, %s694_s6, %s695_s7  }
 0x142   :  { %684 = dma.done.wait [#allocation5], 256  }
 0x143   :  { %685 = vsyncadd [#allocation5], 4294967040 }
 0x144   :  { %460 = vsyncpa [#allocation4], 1 }
 0x145   :  { %461 = vsyncpa [#allocation7], 1 }
 0x146   :  { %462 = vsyncpa [#allocation5], 1 }

</bundles_post_ra>
